<compile_context>
chip_gen: v7x
topology: tpu7x:2x2x1
jax: 0.10.0
libtpu: 0.0.40
codegen_flags: <defaults>
</compile_context>

<pallas_src>
import jax
import jax.numpy as jnp
from jax.experimental import pallas as pl
from jax.experimental.pallas import tpu as pltpu

# ----------------------------- model hyperparameters -----------------------------
D_DIM = 2            # d
K_HID = 300          # k
NUM_LAYERS = 4       # number of (Linear + Swish) blocks
SYS_DIM = 2
NUM_PARTICLES = 6
CH_IN = NUM_PARTICLES * (2 * D_DIM + SYS_DIM)      # 36
CH_OUT = 2 * D_DIM * NUM_PARTICLES                 # 24
CHS = [CH_IN] + NUM_LAYERS * [K_HID] + [CH_OUT]    # [36, 300, 300, 300, 300, 24]
NUM_LIN = len(CHS) - 1                             # 5 linear layers total
NUM_HID_BF16 = NUM_LIN - 2                         # 3 hidden layers stored in bf16

IN_PAD = 128         # padded input width  (36 real features)
H_PAD = 384          # padded hidden width (300 real, 3 x 128 lanes)
OUT_PAD = 128        # padded output width (24 real features)
TILE_B_MAX = 512     # max batch tile (rows)


# --------------------------------- Pallas kernel ----------------------------------
def _fc_mlp_kernel(x_ref, w1_ref, wh_ref, w5_ref, b_ref, out_ref):
    """5-layer MLP: 4x (Linear + Swish) then a final Linear.

    x_ref  : (TILE_B, IN_PAD)                 zero-padded concat(z, sysP) slab
    w1_ref : (IN_PAD, H_PAD)        f32       W1 with zm centering/reorder folded in
    wh_ref : (NUM_HID_BF16, H_PAD, H_PAD) bf16 hidden weights W2..W4
    w5_ref : (H_PAD, OUT_PAD)       f32       output head
    b_ref  : (NUM_LIN, 1, H_PAD)    f32       packed, zero-padded biases
    out_ref: (TILE_B, OUT_PAD)                padded output (real data in [:, :24])
    """
    # Layer 1 (f32 x f32): K = 128 -> one MXU K pass even on v5e.
    y = jnp.dot(x_ref[...], w1_ref[...],
                preferred_element_type=jnp.float32) + b_ref[0]
    h = y * jax.nn.sigmoid(y)                                    # Swish

    # Layers 2..4: bf16 operands, f32 accumulation; statically unrolled.
    for l in range(NUM_HID_BF16):
        y = jnp.dot(h.astype(jnp.bfloat16), wh_ref[l],
                    preferred_element_type=jnp.float32) + b_ref[l + 1]
        h = y * jax.nn.sigmoid(y)                                # Swish

    # Final linear (f32): lane-dense 128-wide output store.
    out_ref[...] = (jnp.dot(h, w5_ref[...],
                            preferred_element_type=jnp.float32)
                    + b_ref[NUM_LIN - 1][:, :OUT_PAD])


def _run_mlp(x_padded, w1, wh, w5, b, tile_b):
    bs_pad = x_padded.shape[0]
    grid = (bs_pad // tile_b,)

    weight_bytes = (4 * IN_PAD * H_PAD                       # W1 (f32)
                    + 2 * NUM_HID_BF16 * H_PAD * H_PAD        # W2..W4 (bf16)
                    + 4 * H_PAD * OUT_PAD                     # W5 (f32)
                    + 4 * NUM_LIN * H_PAD)                    # biases (f32)
    cost = pl.CostEstimate(
        flops=2 * bs_pad * (IN_PAD * H_PAD
                            + NUM_HID_BF16 * H_PAD * H_PAD
                            + H_PAD * OUT_PAD),
        transcendentals=NUM_LAYERS * bs_pad * H_PAD,
        bytes_accessed=weight_bytes + 4 * bs_pad * (IN_PAD + OUT_PAD),
    )

    return pl.pallas_call(
        _fc_mlp_kernel,
        out_shape=jax.ShapeDtypeStruct((bs_pad, OUT_PAD), jnp.float32),
        grid_spec=pltpu.PrefetchScalarGridSpec(
            num_scalar_prefetch=0,
            grid=grid,
            in_specs=[
                # activations: tiled over the batch
                pl.BlockSpec((tile_b, IN_PAD), lambda i: (i, 0)),
                # weights / biases: constant index_map -> fetched once, resident
                pl.BlockSpec((IN_PAD, H_PAD), lambda i: (0, 0)),
                pl.BlockSpec((NUM_HID_BF16, H_PAD, H_PAD), lambda i: (0, 0, 0)),
                pl.BlockSpec((H_PAD, OUT_PAD), lambda i: (0, 0)),
                pl.BlockSpec((NUM_LIN, 1, H_PAD), lambda i: (0, 0, 0)),
            ],
            out_specs=pl.BlockSpec((tile_b, OUT_PAD), lambda i: (i, 0)),
        ),
        compiler_params=pltpu.CompilerParams(
            dimension_semantics=("parallel",),
            vmem_limit_bytes=32 * 1024 * 1024,
        ),
        cost_estimate=cost,
    )(x_padded, w1, wh, w5, b)


# ------------------------------- parameter creation -------------------------------
def init_params(key):
    """Deterministic init mirroring nn.Linear's U(-1/sqrt(fan_in), 1/sqrt(fan_in)).

    Weights stored as (in_features, out_features): y = x @ W + b.
    """
    params = []
    for i in range(NUM_LIN):
        fan_in, fan_out = CHS[i], CHS[i + 1]
        key, kw, kb = jax.random.split(key, 3)
        bound = 1.0 / jnp.sqrt(fan_in)
        w = jax.random.uniform(kw, (fan_in, fan_out), jnp.float32, -bound, bound)
        b = jax.random.uniform(kb, (1, fan_out), jnp.float32, -bound, bound)
        params.append((w, b))
    return params


def pack_params(params):
    """Fold zm construction into W1 and pack tight, lane-aligned weight groups.

    zm = concat[(q - mean_particles q).flatten, p, sysP.flatten] is a linear map
    of x = concat[z, sysP.flatten]:  zm = x @ A, with
        A = block_diag(M, I),  M = I - kron(ones(n,n)/n, I_d).
    Hence layer 1 becomes x @ (A @ W1) + b1 and the kernel only needs the raw
    concatenated input.  W2..W4 are cast to bfloat16 (f32 accumulation in-kernel).
    """
    nd = NUM_PARTICLES * D_DIM
    M = (jnp.eye(nd, dtype=jnp.float32)
         - jnp.kron(jnp.ones((NUM_PARTICLES, NUM_PARTICLES), jnp.float32)
                    / NUM_PARTICLES,
                    jnp.eye(D_DIM, dtype=jnp.float32)))
    A = jnp.zeros((CH_IN, CH_IN), jnp.float32)
    A = A.at[:nd, :nd].set(M)
    A = A.at[nd:, nd:].set(jnp.eye(CH_IN - nd, dtype=jnp.float32))

    w1_eff = A @ params[0][0]                                   # (36, 300)
    w1 = jnp.zeros((IN_PAD, H_PAD), jnp.float32)
    w1 = w1.at[:CH_IN, :K_HID].set(w1_eff)

    wh = jnp.zeros((NUM_HID_BF16, H_PAD, H_PAD), jnp.float32)
    for l in range(NUM_HID_BF16):
        wh = wh.at[l, :K_HID, :K_HID].set(params[l + 1][0])
    wh = wh.astype(jnp.bfloat16)                                # hidden weights bf16

    w5 = jnp.zeros((H_PAD, OUT_PAD), jnp.float32)
    w5 = w5.at[:K_HID, :CH_OUT].set(params[NUM_LIN - 1][0])

    b = jnp.zeros((NUM_LIN, 1, H_PAD), jnp.float32)
    for l in range(NUM_LIN):
        b = b.at[l, 0, :CHS[l + 1]].set(params[l][1].reshape(-1))
    return w1, wh, w5, b


# ----------------------------------- wrapper ---------------------------------------
def _round_up(x, m):
    return ((x + m - 1) // m) * m


@jax.jit
def fc_forward(packed_params, t, z, sysP):
    """Pallas-backed equivalent of FC.forward(t, z, sysP)."""
    del t  # unused in the reference forward
    w1, wh, w5, b = packed_params
    bs = z.shape[0]

    # Raw input slab (centering/reorder already folded into W1).
    x = jnp.concatenate([z, sysP.reshape(bs, -1)], axis=1).astype(jnp.float32)

    # Batch tiling (static under jit):
    #   bs >= 16  -> >= 2 grid steps so v7x's second TensorCore gets work;
    #   large bs  -> tiles up to 512 rows to amortize per-step overhead.
    if bs < 16:
        tile_b = max(8, _round_up(bs, 8))
    else:
        tile_b = min(TILE_B_MAX, _round_up((bs + 1) // 2, 8))
    bs_pad = _round_up(bs, tile_b)

    x_p = jnp.zeros((bs_pad, IN_PAD), jnp.float32).at[:bs, :CH_IN].set(x)
    out = _run_mlp(x_p, w1, wh, w5, b, tile_b)
    return out[:bs, :CH_OUT]


def fc_forward_reference(params, t, z, sysP, match_kernel_quantization=False):
    """Pure-JAX reference mirroring the PyTorch module.

    With match_kernel_quantization=True the hidden layers use the same bf16
    operands / f32 accumulation as the kernel, so any disagreement indicates a
    structural bug (not quantization noise).
    """
    del t
    bs = z.shape[0]
    D = z.shape[-1]
    n = sysP.shape[1]
    q = z[:, :D // 2].reshape(bs, n, -1)
    p = z[:, D // 2:]
    qc = (q - q.mean(axis=1, keepdims=True)).reshape(bs, -1)
    h = jnp.concatenate([qc, p, sysP.reshape(bs, -1)], axis=1)
    for i, (w, b) in enumerate(params):
        if match_kernel_quantization and 1 <= i <= NUM_LIN - 2:
            y = jnp.dot(h.astype(jnp.bfloat16), w.astype(jnp.bfloat16),
                        preferred_element_type=jnp.float32) + b
        else:
            y = h @ w + b
        h = y * jax.nn.sigmoid(y) if i < len(params) - 1 else y
    return h


# ------------------------------------ main ------------------------------------------
if __name__ == "__main__":
    key = jax.random.PRNGKey(0)
    k_params, k_z, k_sys = jax.random.split(key, 3)

    params = init_params(k_params)
    packed = pack_params(params)

    bs = 4
    t = jnp.zeros(())                                                          # unused
    z = jax.random.normal(k_z, (bs, 2 * D_DIM * NUM_PARTICLES), jnp.float32)   # (4, 24)
    sysP = jax.random.normal(k_sys, (bs, NUM_PARTICLES, SYS_DIM), jnp.float32) # (4, 6, 2)

    out = jax.block_until_ready(fc_forward(packed, t, z, sysP))

    # Quantization-matched reference: identical math (bf16 hidden operands, f32
    # accumulation); residual differences are only accumulation-order noise.
    ref = fc_forward_reference(params, t, z, sysP, match_kernel_quantization=True)

    assert out.shape == (bs, CH_OUT), out.shape
    assert jnp.allclose(out, ref, atol=5e-4, rtol=5e-4), \
        float(jnp.max(jnp.abs(out - ref)))

    print("KERNEL_OK")
</pallas_src>

<mosaic_0001>
module attributes {stable_mosaic.version = 11 : i64} {
  func.func @_fc_mlp_kernel(%arg0: i32, %arg1: memref<8x128xf32, #tpu.memory_space<vmem>>, %arg2: memref<128x384xf32, #tpu.memory_space<vmem>>, %arg3: memref<3x384x384xbf16, #tpu.memory_space<vmem>>, %arg4: memref<384x128xf32, #tpu.memory_space<vmem>>, %arg5: memref<5x1x384xf32, #tpu.memory_space<vmem>>, %arg6: memref<8x128xf32, #tpu.memory_space<vmem>>) attributes {dimension_semantics = [#tpu.dimension_semantics<parallel>], iteration_bounds = array<i64: 1>, scalar_prefetch = 0 : i64, scratch_operands = 0 : i64, tpu.core_type = #tpu.core_type<tc>, window_params = [{transform_indices = @transform_0, window_bounds = array<i64: 8, 128>}, {pipeline_mode = #tpu.pipeline_mode<synchronous>, transform_indices = @transform_1, window_bounds = array<i64: 128, 384>}, {pipeline_mode = #tpu.pipeline_mode<synchronous>, transform_indices = @transform_2, window_bounds = array<i64: 3, 384, 384>}, {pipeline_mode = #tpu.pipeline_mode<synchronous>, transform_indices = @transform_3, window_bounds = array<i64: 384, 128>}, {pipeline_mode = #tpu.pipeline_mode<synchronous>, transform_indices = @transform_4, window_bounds = array<i64: 5, 1, 384>}, {transform_indices = @transform_5, window_bounds = array<i64: 8, 128>}]} {
    %c0 = arith.constant 0 : index
    %c0_0 = arith.constant 0 : index
    %0 = vector.load %arg1[%c0, %c0_0] : memref<8x128xf32, #tpu.memory_space<vmem>>, vector<8x128xf32>
    %c0_1 = arith.constant 0 : index
    %c0_2 = arith.constant 0 : index
    %1 = vector.load %arg2[%c0_1, %c0_2] : memref<128x384xf32, #tpu.memory_space<vmem>>, vector<128x384xf32>
    %cst = arith.constant dense<0.000000e+00> : vector<8x384xf32>
    %2 = tpu.matmul %0, %1, %cst {dimension_numbers = #tpu.dot_dimension_numbers<[1], [0], [0], [1], [0, 0, 1, 1], [], []>} : vector<8x128xf32>, vector<128x384xf32>, vector<8x384xf32> -> vector<8x384xf32>
    %c0_3 = arith.constant 0 : index
    %c0_4 = arith.constant 0 : index
    %c0_5 = arith.constant 0 : index
    %3 = vector.load %arg5[%c0_3, %c0_4, %c0_5] : memref<5x1x384xf32, #tpu.memory_space<vmem>>, vector<1x1x384xf32>
    %4 = vector.shape_cast %3 : vector<1x1x384xf32> to vector<1x384xf32>
    %5 = vector.broadcast %4 : vector<1x384xf32> to vector<8x384xf32>
    %6 = arith.addf %2, %5 : vector<8x384xf32>
    %7 = arith.negf %6 : vector<8x384xf32>
    %8 = math.exp %7 : vector<8x384xf32>
    %cst_6 = arith.constant 1.000000e+00 : f32
    %9 = vector.broadcast %cst_6 : f32 to vector<8x384xf32>
    %10 = arith.addf %9, %8 : vector<8x384xf32>
    %11 = arith.divf %9, %10 : vector<8x384xf32>
    %12 = arith.mulf %6, %11 : vector<8x384xf32>
    %13 = arith.truncf %12 : vector<8x384xf32> to vector<8x384xbf16>
    %c0_7 = arith.constant 0 : index
    %c0_8 = arith.constant 0 : index
    %c0_9 = arith.constant 0 : index
    %14 = vector.load %arg3[%c0_7, %c0_8, %c0_9] : memref<3x384x384xbf16, #tpu.memory_space<vmem>>, vector<1x384x384xbf16>
    %15 = vector.shape_cast %14 : vector<1x384x384xbf16> to vector<384x384xbf16>
    %cst_10 = arith.constant dense<0.000000e+00> : vector<8x384xf32>
    %16 = tpu.matmul %13, %15, %cst_10 {dimension_numbers = #tpu.dot_dimension_numbers<[1], [0], [0], [1], [0, 0, 1, 1], [], []>} : vector<8x384xbf16>, vector<384x384xbf16>, vector<8x384xf32> -> vector<8x384xf32>
    %c1 = arith.constant 1 : index
    %c0_11 = arith.constant 0 : index
    %c0_12 = arith.constant 0 : index
    %17 = vector.load %arg5[%c1, %c0_11, %c0_12] : memref<5x1x384xf32, #tpu.memory_space<vmem>>, vector<1x1x384xf32>
    %18 = vector.shape_cast %17 : vector<1x1x384xf32> to vector<1x384xf32>
    %19 = vector.broadcast %18 : vector<1x384xf32> to vector<8x384xf32>
    %20 = arith.addf %16, %19 : vector<8x384xf32>
    %21 = arith.negf %20 : vector<8x384xf32>
    %22 = math.exp %21 : vector<8x384xf32>
    %cst_13 = arith.constant 1.000000e+00 : f32
    %23 = vector.broadcast %cst_13 : f32 to vector<8x384xf32>
    %24 = arith.addf %23, %22 : vector<8x384xf32>
    %25 = arith.divf %23, %24 : vector<8x384xf32>
    %26 = arith.mulf %20, %25 : vector<8x384xf32>
    %27 = arith.truncf %26 : vector<8x384xf32> to vector<8x384xbf16>
    %c1_14 = arith.constant 1 : index
    %c0_15 = arith.constant 0 : index
    %c0_16 = arith.constant 0 : index
    %28 = vector.load %arg3[%c1_14, %c0_15, %c0_16] : memref<3x384x384xbf16, #tpu.memory_space<vmem>>, vector<1x384x384xbf16>
    %29 = vector.shape_cast %28 : vector<1x384x384xbf16> to vector<384x384xbf16>
    %cst_17 = arith.constant dense<0.000000e+00> : vector<8x384xf32>
    %30 = tpu.matmul %27, %29, %cst_17 {dimension_numbers = #tpu.dot_dimension_numbers<[1], [0], [0], [1], [0, 0, 1, 1], [], []>} : vector<8x384xbf16>, vector<384x384xbf16>, vector<8x384xf32> -> vector<8x384xf32>
    %c2 = arith.constant 2 : index
    %c0_18 = arith.constant 0 : index
    %c0_19 = arith.constant 0 : index
    %31 = vector.load %arg5[%c2, %c0_18, %c0_19] : memref<5x1x384xf32, #tpu.memory_space<vmem>>, vector<1x1x384xf32>
    %32 = vector.shape_cast %31 : vector<1x1x384xf32> to vector<1x384xf32>
    %33 = vector.broadcast %32 : vector<1x384xf32> to vector<8x384xf32>
    %34 = arith.addf %30, %33 : vector<8x384xf32>
    %35 = arith.negf %34 : vector<8x384xf32>
    %36 = math.exp %35 : vector<8x384xf32>
    %cst_20 = arith.constant 1.000000e+00 : f32
    %37 = vector.broadcast %cst_20 : f32 to vector<8x384xf32>
    %38 = arith.addf %37, %36 : vector<8x384xf32>
    %39 = arith.divf %37, %38 : vector<8x384xf32>
    %40 = arith.mulf %34, %39 : vector<8x384xf32>
    %41 = arith.truncf %40 : vector<8x384xf32> to vector<8x384xbf16>
    %c2_21 = arith.constant 2 : index
    %c0_22 = arith.constant 0 : index
    %c0_23 = arith.constant 0 : index
    %42 = vector.load %arg3[%c2_21, %c0_22, %c0_23] : memref<3x384x384xbf16, #tpu.memory_space<vmem>>, vector<1x384x384xbf16>
    %43 = vector.shape_cast %42 : vector<1x384x384xbf16> to vector<384x384xbf16>
    %cst_24 = arith.constant dense<0.000000e+00> : vector<8x384xf32>
    %44 = tpu.matmul %41, %43, %cst_24 {dimension_numbers = #tpu.dot_dimension_numbers<[1], [0], [0], [1], [0, 0, 1, 1], [], []>} : vector<8x384xbf16>, vector<384x384xbf16>, vector<8x384xf32> -> vector<8x384xf32>
    %c3 = arith.constant 3 : index
    %c0_25 = arith.constant 0 : index
    %c0_26 = arith.constant 0 : index
    %45 = vector.load %arg5[%c3, %c0_25, %c0_26] : memref<5x1x384xf32, #tpu.memory_space<vmem>>, vector<1x1x384xf32>
    %46 = vector.shape_cast %45 : vector<1x1x384xf32> to vector<1x384xf32>
    %47 = vector.broadcast %46 : vector<1x384xf32> to vector<8x384xf32>
    %48 = arith.addf %44, %47 : vector<8x384xf32>
    %49 = arith.negf %48 : vector<8x384xf32>
    %50 = math.exp %49 : vector<8x384xf32>
    %cst_27 = arith.constant 1.000000e+00 : f32
    %51 = vector.broadcast %cst_27 : f32 to vector<8x384xf32>
    %52 = arith.addf %51, %50 : vector<8x384xf32>
    %53 = arith.divf %51, %52 : vector<8x384xf32>
    %54 = arith.mulf %48, %53 : vector<8x384xf32>
    %c0_28 = arith.constant 0 : index
    %c0_29 = arith.constant 0 : index
    %55 = vector.load %arg4[%c0_28, %c0_29] : memref<384x128xf32, #tpu.memory_space<vmem>>, vector<384x128xf32>
    %cst_30 = arith.constant dense<0.000000e+00> : vector<8x128xf32>
    %56 = tpu.matmul %54, %55, %cst_30 {dimension_numbers = #tpu.dot_dimension_numbers<[1], [0], [0], [1], [0, 0, 1, 1], [], []>} : vector<8x384xf32>, vector<384x128xf32>, vector<8x128xf32> -> vector<8x128xf32>
    %c4 = arith.constant 4 : index
    %c0_31 = arith.constant 0 : index
    %c0_32 = arith.constant 0 : index
    %57 = vector.load %arg5[%c4, %c0_31, %c0_32] : memref<5x1x384xf32, #tpu.memory_space<vmem>>, vector<1x1x384xf32>
    %58 = vector.shape_cast %57 : vector<1x1x384xf32> to vector<1x384xf32>
    %59 = vector.extract_strided_slice %58 {offsets = [0, 0], sizes = [1, 128], strides = [1, 1]} : vector<1x384xf32> to vector<1x128xf32>
    %60 = vector.broadcast %59 : vector<1x128xf32> to vector<8x128xf32>
    %61 = arith.addf %56, %60 : vector<8x128xf32>
    %c0_33 = arith.constant 0 : index
    %c0_34 = arith.constant 0 : index
    %62 = vector.load %arg6[%c0_33, %c0_34] : memref<8x128xf32, #tpu.memory_space<vmem>>, vector<8x128xf32>
    tpu.vector_store %arg6[%c0_33, %c0_34], %61 {strides = array<i32>} : memref<8x128xf32, #tpu.memory_space<vmem>>, vector<8x128xf32>,
    return
  }
  func.func @transform_0(%arg0: i32) -> (i32, i32) {
    %c0_i32 = arith.constant 0 : i32
    %c0_i32_0 = arith.constant 0 : i32
    return %arg0, %c0_i32 : i32, i32
  }
  func.func @transform_1(%arg0: i32) -> (i32, i32) {
    %c0_i32 = arith.constant 0 : i32
    %c0_i32_0 = arith.constant 0 : i32
    %c0_i32_1 = arith.constant 0 : i32
    return %c0_i32, %c0_i32_0 : i32, i32
  }
  func.func @transform_2(%arg0: i32) -> (i32, i32, i32) {
    %c0_i32 = arith.constant 0 : i32
    %c0_i32_0 = arith.constant 0 : i32
    %c0_i32_1 = arith.constant 0 : i32
    %c0_i32_2 = arith.constant 0 : i32
    return %c0_i32, %c0_i32_0, %c0_i32_1 : i32, i32, i32
  }
  func.func @transform_3(%arg0: i32) -> (i32, i32) {
    %c0_i32 = arith.constant 0 : i32
    %c0_i32_0 = arith.constant 0 : i32
    %c0_i32_1 = arith.constant 0 : i32
    return %c0_i32, %c0_i32_0 : i32, i32
  }
  func.func @transform_4(%arg0: i32) -> (i32, i32, i32) {
    %c0_i32 = arith.constant 0 : i32
    %c0_i32_0 = arith.constant 0 : i32
    %c0_i32_1 = arith.constant 0 : i32
    %c0_i32_2 = arith.constant 0 : i32
    return %c0_i32, %c0_i32_0, %c0_i32_1 : i32, i32, i32
  }
  func.func @transform_5(%arg0: i32) -> (i32, i32) {
    %c0_i32 = arith.constant 0 : i32
    %c0_i32_0 = arith.constant 0 : i32
    return %arg0, %c0_i32 : i32, i32
  }
}

</mosaic_0001>

<bundles_post_ra>
// kernel: fc_forward.1
= control target key start
LH: loop header
LB: loop body
LE: loop exit
PB: predicated region body
PF: predicated region fallthrough
CT: control target
= control target key end

     0   :  { %10 = vsyncpa [#allocation3], 0  ;;  %s3805_s0 = inlined_call_operand.vmem [shape: f32[8,128], index: 0, kind: input, shape index: {}]   ;;  %s3806_s1 = inlined_call_operand.hbm [shape: f32[128,384], index: 1, kind: input, shape index: {}]   ;;  %s3807_s2 = inlined_call_operand.hbm [shape: bf16[3,384,384], index: 2, kind: input, shape index: {}]   ;;  %s3808_s3 = inlined_call_operand.hbm [shape: f32[384,128], index: 3, kind: input, shape index: {}]   ;;  %s3809_s4 = inlined_call_operand.vmem [shape: f32[5,1,384], index: 4, kind: input, shape index: {}]   ;;  %s3810_s5 = inlined_call_operand.vmem [shape: f32[8,128], index: 5, kind: output, shape index: {}]  }
   0x1   :  { %11 = vsyncpa [#allocation5], 0  ;;  %s3620_s18 = smov [#allocation4]   ;;  %s3550_s22 = scalar_lea.hbm %s3807_s2, 27648 }
   0x2   :  { %s31_s19 = sshll.u32 %s3620_s18, 4  ;;  %p3551_p0 = scmp.ne.s32.totalorder %s3807_s2, %s3550_s22  ;;  %s32_s19 = int_to_ptr.vmem [resolvable:$true] %s31_s19 }
   0x3   :  { %p3554_p1 = scmp.lt.u32.totalorder %s3550_s22, %s3807_s2 }
   0x5   :  { %p3556_p2 = pnand %p3554_p1, %p3551_p0 }
   0x7   :  { %3559 = shalt.err (!%p3556_p2)
}
   0x8   :  { %s3560_s27 = scalar_lea.vmem %s32_s19, 27648  ;;  %p3565_p4 = scmp.lt.s32.totalorder %s32_s19, %s32_s19 }
   0x9   :  { %p3561_p3 = scmp.ne.s32.totalorder %s32_s19, %s3560_s27  ;;  %p3566_p5 = scmp.lt.s32.totalorder %s3560_s27, %s3560_s27 }
   0xb   :  { %p3567_p6 = por %p3566_p5, %p3565_p4 }
   0xd   :  { %p3568_p7 = pnand %p3567_p6, %p3561_p3 }
   0xf   :  { %3571 = shalt.err (!%p3568_p7)
}
  0x10   :  { %s3621_s28 = smov 192   ;;  %s3622_s29 = smov 12  }
  0x11   :  { %37 = dma.hbm_to_vmem [thread:$0]  %s3807_s2, 27648, %s32_s19, [#allocation5], %s3621_s28, %s3621_s28, %s3622_s29  }
  0x12   :  { %s3623_s7 = smov [#allocation2]   ;;  %s3572_s11 = scalar_lea.hbm %s3806_s1, 6144 }
  0x13   :  { %s19_s8 = sshll.u32 %s3623_s7, 4  ;;  %p3573_p8 = scmp.ne.s32.totalorder %s3806_s1, %s3572_s11  ;;  %s20_s8 = int_to_ptr.vmem [resolvable:$true] %s19_s8 }
  0x14   :  { %p3576_p9 = scmp.lt.u32.totalorder %s3572_s11, %s3806_s1 }
  0x16   :  { %p3578_p10 = pnand %p3576_p9, %p3573_p8 }
  0x18   :  { %3581 = shalt.err (!%p3578_p10)
}
  0x19   :  { %s3582_s16 = scalar_lea.vmem %s20_s8, 6144  ;;  %p3587_p12 = scmp.lt.s32.totalorder %s20_s8, %s20_s8 }
  0x1a   :  { %p3583_p11 = scmp.ne.s32.totalorder %s20_s8, %s3582_s16  ;;  %p3588_p13 = scmp.lt.s32.totalorder %s3582_s16, %s3582_s16 }
  0x1c   :  { %p3589_p0 = por %p3588_p13, %p3587_p12 }
  0x1e   :  { %p3590_p1 = pnand %p3589_p0, %p3583_p11 }
  0x20   :  { %3593 = shalt.err (!%p3590_p1)
}
  0x21   :  { %s3624_s2 = smov 384   ;;  %s3625_s17 = smov 24  }
  0x22   :  { %25 = dma.hbm_to_vmem [thread:$0]  %s3806_s1, 6144, %s20_s8, [#allocation3], %s3624_s2, %s3624_s2, %s3625_s17  }
  0x23   :  { %s3626_s20 = smov [#allocation6]   ;;  %s3594_s24 = scalar_lea.hbm %s3808_s3, 6144 }
  0x24   :  { %s43_s21 = sshll.u32 %s3626_s20, 4  ;;  %p3595_p2 = scmp.ne.s32.totalorder %s3808_s3, %s3594_s24  ;;  %s44_s21 = int_to_ptr.vmem [resolvable:$true] %s43_s21 }
  0x25   :  { %p3598_p3 = scmp.lt.u32.totalorder %s3594_s24, %s3808_s3 }
  0x27   :  { %p3600_p4 = pnand %p3598_p3, %p3595_p2 }
  0x29   :  { %3603 = shalt.err (!%p3600_p4)
}
  0x2a   :  { %s3604_s29 = scalar_lea.vmem %s44_s21, 6144  ;;  %p3609_p6 = scmp.lt.s32.totalorder %s44_s21, %s44_s21 }
  0x2b   :  { %p3605_p5 = scmp.ne.s32.totalorder %s44_s21, %s3604_s29  ;;  %p3610_p7 = scmp.lt.s32.totalorder %s3604_s29, %s3604_s29 }
  0x2d   :  { %p3611_p8 = por %p3610_p7, %p3609_p6 }
  0x2f   :  { %p3612_p9 = pnand %p3611_p8, %p3605_p5 }
  0x31   :  { %3615 = shalt.err (!%p3612_p9)
}
  0x32   :  { %s3627_s1 = smov 128   ;;  %s3628_s30 = smov 8  }
  0x33   :  { %49 = dma.hbm_to_vmem [thread:$0]  %s3808_s3, 6144, %s44_s21, [#allocation5], %s3627_s1, %s3627_s1, %s3628_s30  }
  0x34   :  { %3616 = dma.done.wait [#allocation3], 6144  }
  0x35   :  { %3617 = vsyncadd [#allocation3], 4294961152 }
  0x36   :  { %3618 = dma.done.wait [#allocation5], 33792  }
  0x37   :  { %3619 = vsyncadd [#allocation5], 4294933504  ;;  %v3629_v0 = vmov 0.0|0.0   ;;  %v3630_v1 = vmov 0.0   ;;  %vm3631_vm0 = vmmov 0   ;;  %v64_v2 = vld [vmem:[#allocation2 + $0x8] sm:$0xff] }
  0x38   :  { %3103 = vmatprep.subr.bf16.mxu1 %v3629_v0  ;;  %192 = vmatprep.mubr.f32.mxu0 %v3630_v1  ;;  %v67_v3 = vld [vmem:[#allocation2 + $0x20] sm:$0xff]  ;;  %v66_v6 = vld [vmem:[#allocation2 + $0x18] sm:$0xff]  ;;  %v73_v8 = vld [vmem:[#allocation2 + $0x50] sm:$0xff] }
  0x39   :  { %2973 = vmatprep.mubr.msk.f32.mxu1 %vm3631_vm0, %v3630_v1  ;;  %v63_v4 = vld [vmem:[#allocation2] sm:$0xff]  ;;  %v3071_v5 = vpack.c.bf16 %v67_v3, %v64_v2  ;;  %v70_v7 = vld [vmem:[#allocation2 + $0x38] sm:$0xff]  ;;  %v69_v11 = vld [vmem:[#allocation2 + $0x30] sm:$0xff] }
  0x3a   :  { %v3073_v9 = vpack.c.bf16 %v66_v6, %v63_v4  ;;  %v3075_v10 = vpack.c.bf16 %v73_v8, %v70_v7  ;;  %v72_v12 = vld [vmem:[#allocation2 + $0x48] sm:$0xff]  ;;  %v79_v14 = vld [vmem:[#allocation2 + $0x80] sm:$0xff]  ;;  %v65_v15 = vld [vmem:[#allocation2 + $0x10] sm:$0xff] }
  0x3b   :  { %v76_v13 = vld [vmem:[#allocation2 + $0x68] sm:$0xff]  ;;  %3072 = vmatprep.subr.bf16.mxu0 %v3071_v5  ;;  %v3077_v17 = vpack.c.bf16 %v72_v12, %v69_v11  ;;  %v75_v19 = vld [vmem:[#allocation2 + $0x60] sm:$0xff]  ;;  %v78_v21 = vld [vmem:[#allocation2 + $0x78] sm:$0xff] }
  0x3c   :  { %v68_v16 = vld [vmem:[#allocation2 + $0x28] sm:$0xff]  ;;  %3074 = vmatpush1.bf16.msra.mxu0 %v3073_v9  ;;  %v3079_v20 = vpack.c.bf16 %v79_v14, %v76_v13  ;;  %v71_v22 = vld [vmem:[#allocation2 + $0x40] sm:$0xff]  ;;  %v74_v23 = vld [vmem:[#allocation2 + $0x58] sm:$0xff]  ;;  %v3081_v29 = vpack.c.bf16 %v78_v21, %v75_v19 }
  0x3d   :  { %v3104_v18 = vpack.c.bf16 %v68_v16, %v65_v15  ;;  %3076 = vmatprep.subr.bf16.mxu0 %v3075_v10  ;;  %v82_v24 = vld [vmem:[#allocation2 + $0x98] sm:$0xff]  ;;  %v85_v25 = vld [vmem:[#allocation2 + $0xb0] sm:$0xff]  ;;  %v3107_v26 = vpack.c.bf16 %v74_v23, %v71_v22  ;;  %v80_v28 = vld [vmem:[#allocation2 + $0x88] sm:$0xff] }
  0x3e   :  { %v77_v27 = vld [vmem:[#allocation2 + $0x70] sm:$0xff]  ;;  %v3083_v30 = vpack.c.bf16 %v85_v25, %v82_v24  ;;  %v84_v32 = vld [vmem:[#allocation2 + $0xa8] sm:$0xff]  ;;  %v91_v34 = vld [vmem:[#allocation2 + $0xe0] sm:$0xff] }
  0x3f   :  { %3105 = vmatpush3.bf16.msra.mxu1 %v3104_v18  ;;  %v81_v31 = vld [vmem:[#allocation2 + $0x90] sm:$0xff]  ;;  %v88_v33 = vld [vmem:[#allocation2 + $0xc8] sm:$0xff]  ;;  %v3110_v35 = vpack.c.bf16 %v80_v28, %v77_v27  ;;  %v83_v36 = vld [vmem:[#allocation2 + $0xa0] sm:$0xff] }
  0x40   :  { %3106 = vmatprep.subr.bf16.mxu1 %v3629_v0  ;;  %3078 = vmatpush1.bf16.msra.mxu0 %v3077_v17  ;;  %v86_v37 = vld [vmem:[#allocation2 + $0xb8] sm:$0xff]  ;;  %v3085_v38 = vpack.c.bf16 %v84_v32, %v81_v31  ;;  %v3087_v39 = vpack.c.bf16 %v91_v34, %v88_v33  ;;  %v87_v40 = vld [vmem:[#allocation2 + $0xc0] sm:$0xff]  ;;  %v97_v43 = vld [vmem:[#allocation2 + $0x110] sm:$0xff] }
  0x41   :  { %3080 = vmatprep.subr.bf16.mxu0 %v3079_v20  ;;  %v90_v41 = vld [vmem:[#allocation2 + $0xd8] sm:$0xff]  ;;  %v3113_v44 = vpack.c.bf16 %v86_v37, %v83_v36  ;;  %v89_v45 = vld [vmem:[#allocation2 + $0xd0] sm:$0xff]  ;;  %v92_v46 = vld [vmem:[#allocation2 + $0xe8] sm:$0xff] }
  0x42   :  { %v94_v42 = vld [vmem:[#allocation2 + $0xf8] sm:$0xff]  ;;  %v3089_v47 = vpack.c.bf16 %v90_v41, %v87_v40  ;;  %v93_v48 = vld [vmem:[#allocation2 + $0xf0] sm:$0xff]  ;;  %v96_v50 = vld [vmem:[#allocation2 + $0x108] sm:$0xff]  ;;  %v3116_v53 = vpack.c.bf16 %v92_v46, %v89_v45 }
  0x43   :  { %3108 = vmatpush3.bf16.msra.mxu1 %v3107_v26  ;;  %v3091_v49 = vpack.c.bf16 %v97_v43, %v94_v42  ;;  %v100_v51 = vld [vmem:[#allocation2 + $0x128] sm:$0xff]  ;;  %v103_v52 = vld [vmem:[#allocation2 + $0x140] sm:$0xff]  ;;  %v98_v55 = vld [vmem:[#allocation2 + $0x118] sm:$0xff]  ;;  %v3093_v56 = vpack.c.bf16 %v96_v50, %v93_v48 }
  0x44   :  { %3109 = vmatprep.subr.bf16.mxu1 %v3629_v0  ;;  %3082 = vmatpush1.bf16.msra.mxu0 %v3081_v29  ;;  %v95_v54 = vld [vmem:[#allocation2 + $0x100] sm:$0xff]  ;;  %v3095_v58 = vpack.c.bf16 %v103_v52, %v100_v51  ;;  %v102_v59 = vld [vmem:[#allocation2 + $0x138] sm:$0xff]  ;;  %v109_v61 = vld [vmem:[#allocation2 + $0x170] sm:$0xff] }
  0x45   :  { %3084 = vmatprep.subr.bf16.mxu0 %v3083_v30  ;;  %v99_v57 = vld [vmem:[#allocation2 + $0x120] sm:$0xff]  ;;  %v106_v60 = vld [vmem:[#allocation2 + $0x158] sm:$0xff]  ;;  %v3119_v62 = vpack.c.bf16 %v98_v55, %v95_v54  ;;  %v101_v63 = vld [vmem:[#allocation2 + $0x130] sm:$0xff] }
  0x46   :  { %v104_v2 = vld [vmem:[#allocation2 + $0x148] sm:$0xff]  ;;  %v3097_v3 = vpack.c.bf16 %v102_v59, %v99_v57  ;;  %v3099_v4 = vpack.c.bf16 %v109_v61, %v106_v60  ;;  %v105_v5 = vld [vmem:[#allocation2 + $0x150] sm:$0xff]  ;;  %v107_v8 = vld [vmem:[#allocation2 + $0x160] sm:$0xff] }
  0x47   :  { %3111 = vmatpush3.bf16.msra.mxu1 %v3110_v35  ;;  %v108_v6 = vld [vmem:[#allocation2 + $0x168] sm:$0xff]  ;;  %v3122_v7 = vpack.c.bf16 %v104_v2, %v101_v63  ;;  %v110_v9 = vld [vmem:[#allocation2 + $0x178] sm:$0xff]  ;;  %v3216_v10 = vld [vmem:[#allocation4 + $0x4] ss:$12 sps:$4 sm:$0xff]  }
  0x48   :  { %3112 = vmatprep.subr.bf16.mxu1 %v3629_v0  ;;  %3086 = vmatpush1.bf16.msra.mxu0 %v3085_v38  ;;  %v3101_v11 = vpack.c.bf16 %v108_v6, %v105_v5  ;;  %v62_v12 = vld [vmem:[%s3805_s0] sm:$0xff]  ;;  %v3125_v13 = vpack.c.bf16 %v110_v9, %v107_v8  ;;  %v3219_v15 = vld [vmem:[#allocation4 + $0x1c] ss:$12 sps:$4 sm:$0xff]   ;;  %v3225_v19 = vld [vmem:[#allocation4 + $0x4c] ss:$12 sps:$4 sm:$0xff]  }
  0x49   :  { %3088 = vmatprep.subr.bf16.mxu0 %v3087_v39  ;;  %v3214_v14 = vld [vmem:[#allocation4] ss:$12 sps:$4 sm:$0xff]   ;;  %v3217_v16 = vld [vmem:[#allocation4 + $0x18] ss:$12 sps:$4 sm:$0xff]   ;;  %v3220_v18 = vld [vmem:[#allocation4 + $0x30] ss:$12 sps:$4 sm:$0xff]  }
  0x4a   :  { %v3222_v17 = vld [vmem:[#allocation4 + $0x34] ss:$12 sps:$4 sm:$0xff]   ;;  %v3228_v21 = vld [vmem:[#allocation4 + $0x64] ss:$12 sps:$4 sm:$0xff]   ;;  %v3231_v23 = vld [vmem:[#allocation4 + $0x7c] ss:$12 sps:$4 sm:$0xff]  }
  0x4b   :  { %3114 = vmatpush3.bf16.msra.mxu1 %v3113_v44  ;;  %v3223_v20 = vld [vmem:[#allocation4 + $0x48] ss:$12 sps:$4 sm:$0xff]   ;;  %v3226_v22 = vld [vmem:[#allocation4 + $0x60] ss:$12 sps:$4 sm:$0xff]   ;;  %v3229_v24 = vld [vmem:[#allocation4 + $0x78] ss:$12 sps:$4 sm:$0xff]  }
  0x4c   :  { %3115 = vmatprep.subr.bf16.mxu1 %v3629_v0  ;;  %3090 = vmatpush1.bf16.msra.mxu0 %v3089_v47  ;;  %v3234_v25 = vld [vmem:[#allocation4 + $0x94] ss:$12 sps:$4 sm:$0xff]   ;;  %v3232_v26 = vld [vmem:[#allocation4 + $0x90] ss:$12 sps:$4 sm:$0xff]   ;;  %v3237_v27 = vld [vmem:[#allocation4 + $0xac] ss:$12 sps:$4 sm:$0xff]  }
  0x4d   :  { %3092 = vmatprep.subr.bf16.mxu0 %v3091_v49  ;;  %v3235_v28 = vld [vmem:[#allocation4 + $0xa8] ss:$12 sps:$4 sm:$0xff]   ;;  %v3240_v29 = vld [vmem:[#allocation4 + $0xc4] ss:$12 sps:$4 sm:$0xff]   ;;  %v3238_v31 = vld [vmem:[#allocation4 + $0xc0] ss:$12 sps:$4 sm:$0xff]  }
  0x4e   :  { %v3241_v30 = vld [vmem:[#allocation4 + $0xc8] ss:$12 sps:$4 sm:$0xff]   ;;  %v3246_v34 = vld [vmem:[#allocation4 + $0xe0] ss:$12 sps:$4 sm:$0xff]   ;;  %v3243_v35 = vld [vmem:[#allocation4 + $0xd8] ss:$12 sps:$4 sm:$0xff]  }
  0x4f   :  { %3117 = vmatpush3.bf16.msra.mxu1 %v3116_v53  ;;  %v3242_v32 = vld [vmem:[#allocation4 + $0x8] ss:$12 sps:$4 sm:$0xff]   ;;  %v3247_v36 = vld [vmem:[#allocation4 + $0x20] ss:$12 sps:$4 sm:$0xff]   ;;  %v3251_v38 = vld [vmem:[#allocation4 + $0xf8] ss:$12 sps:$4 sm:$0xff]  }
  0x50   :  { %3118 = vmatprep.subr.bf16.mxu1 %v3629_v0  ;;  %3094 = vmatpush1.bf16.msra.mxu0 %v3093_v56  ;;  %v3245_v33 = vld [vmem:[#allocation4 + $0xdc] ss:$12 sps:$4 sm:$0xff]   ;;  %v3250_v37 = vld [vmem:[#allocation4 + $0xf4] ss:$12 sps:$4 sm:$0xff]   ;;  %v3252_v40 = vld [vmem:[#allocation4 + $0x38] ss:$12 sps:$4 sm:$0xff]  }
  0x51   :  { %3096 = vmatprep.subr.bf16.mxu0 %v3095_v58  ;;  %v3248_v39 = vld [vmem:[#allocation4 + $0xf0] ss:$12 sps:$4 sm:$0xff]   ;;  %v3255_v41 = vld [vmem:[#allocation4 + $0x10c] ss:$12 sps:$4 sm:$0xff]   ;;  %v3253_v43 = vld [vmem:[#allocation4 + $0x108] ss:$12 sps:$4 sm:$0xff]  }
  0x52   :  { %v3256_v42 = vld [vmem:[#allocation4 + $0x110] ss:$12 sps:$4 sm:$0xff]   ;;  %v3261_v46 = vld [vmem:[#allocation4 + $0x128] ss:$12 sps:$4 sm:$0xff]   ;;  %v3258_v47 = vld [vmem:[#allocation4 + $0x120] ss:$12 sps:$4 sm:$0xff]  }
  0x53   :  { %3120 = vmatpush3.bf16.msra.mxu1 %v3119_v62  ;;  %v3257_v44 = vld [vmem:[#allocation4 + $0x50] ss:$12 sps:$4 sm:$0xff]   ;;  %v3262_v48 = vld [vmem:[#allocation4 + $0x68] ss:$12 sps:$4 sm:$0xff]   ;;  %v3266_v50 = vld [vmem:[#allocation4 + $0x140] ss:$12 sps:$4 sm:$0xff]   ;;  %v113_v62 = vlaneseq }
  0x54   :  { %3121 = vmatprep.subr.bf16.mxu1 %v3629_v0  ;;  %3098 = vmatpush1.bf16.msra.mxu0 %v3097_v3  ;;  %v3260_v45 = vld [vmem:[#allocation4 + $0x124] ss:$12 sps:$4 sm:$0xff]   ;;  %v3265_v49 = vld [vmem:[#allocation4 + $0x13c] ss:$12 sps:$4 sm:$0xff]   ;;  %v3267_v52 = vld [vmem:[#allocation4 + $0x80] ss:$12 sps:$4 sm:$0xff]  }
  0x55   :  { %3100 = vmatprep.subr.bf16.mxu0 %v3099_v4  ;;  %v3263_v51 = vld [vmem:[#allocation4 + $0x138] ss:$12 sps:$4 sm:$0xff]   ;;  %v3270_v53 = vld [vmem:[#allocation4 + $0x154] ss:$12 sps:$4 sm:$0xff]   ;;  %v3268_v55 = vld [vmem:[#allocation4 + $0x150] ss:$12 sps:$4 sm:$0xff]  }
  0x56   :  { %v3271_v54 = vld [vmem:[#allocation4 + $0x158] ss:$12 sps:$4 sm:$0xff]   ;;  %v3276_v58 = vld [vmem:[#allocation4 + $0x170] ss:$12 sps:$4 sm:$0xff]   ;;  %v3273_v59 = vld [vmem:[#allocation4 + $0x168] ss:$12 sps:$4 sm:$0xff]  }
  0x57   :  { %3123 = vmatpush3.bf16.msra.mxu1 %v3122_v7  ;;  %v3272_v56 = vld [vmem:[#allocation4 + $0x98] ss:$12 sps:$4 sm:$0xff]   ;;  %v3277_v60 = vld [vmem:[#allocation4 + $0xb0] ss:$12 sps:$4 sm:$0xff]   ;;  %v114_v63 = vshrl.u32 %v113_v62, 7 }
  0x58   :  { %3124 = vmatprep.subr.bf16.mxu1 %v3629_v0  ;;  %3102 = vmatpush1.bf16.msra.mxu0 %v3101_v11  ;;  %v3275_v57 = vld [vmem:[#allocation4 + $0x16c] ss:$12 sps:$4 sm:$0xff]   ;;  %v3280_v61 = vld [vmem:[#allocation4 + $0x184] ss:$12 sps:$4 sm:$0xff]   ;;  %v111_v3 = vld [vmem:[%s3809_s4] sm:$0x7] }
  0x59   :  { %791 = vmatprep.subr.bf16.mxu0 %v3216_v10  ;;  %v3714_v2 = vsub.s32 0, %v114_v63  ;;  %v3719_v4 = vsub.s32 1, %v114_v63  ;;  %v3318_v62 = vld [vmem:[#allocation4 + $0x274] ss:$12 sps:$4 sm:$0xff]  }
  0x5b   :  { %3126 = vmatpush3.bf16.msra.mxu1 %v3125_v13  ;;  %193 = vmatmul.mubr.f32.vlgmr.msra.gmra.mrb[0].mxu0 %v62_v12  ;;  %v116_v5 = vrot.slane %v111_v3, %v3714_v2  ;;  %v120_v6 = vrot.slane %v111_v3, %v3719_v4 }
  0x5c   :  { %792 = vmatpush1.bf16.msra.mxu0 %v3214_v14  ;;  %2796 = vmatprep.subr.bf16.mxu1 %v3241_v30 }
  0x5d   :  { %793 = vmatprep.subr.bf16.mxu0 %v3219_v15 }
  0x5e   :  { %2974 = vmatmul.mubr.f32.vlgmr.msra.gmra.mrb[0].mxu1 %v62_v12 }
  0x5f   :  { %2797 = vmatpush3.bf16.msra.mxu1 %v3242_v32  ;;  %v3282_v32 = vld [vmem:[#allocation4 + $0x198] ss:$12 sps:$4 sm:$0xff]  }
  0x60   :  { %794 = vmatpush1.bf16.msra.mxu0 %v3217_v16  ;;  %2798 = vmatprep.subr.bf16.mxu1 %v3246_v34  ;;  %v3723_v16 = vsub.s32 2, %v114_v63  ;;  %v3288_v34 = vld [vmem:[#allocation4 + $0x1b4] ss:$12 sps:$4 sm:$0xff]   ;;  %v3316_v63 = vld [vmem:[#allocation4 + $0x270] ss:$12 sps:$4 sm:$0xff]  }
  0x61   :  { %795 = vmatprep.subr.bf16.mxu0 %v3222_v17 }
  0x63   :  { %2799 = vmatpush3.bf16.msra.mxu1 %v3247_v36  ;;  %v3286_v36 = vld [vmem:[#allocation4 + $0x1b0] ss:$12 sps:$4 sm:$0xff]  }
  0x64   :  { %796 = vmatpush1.bf16.msra.mxu0 %v3220_v18  ;;  %2800 = vmatprep.subr.bf16.mxu1 %v3251_v38 }
  0x65   :  { %797 = vmatprep.subr.bf16.mxu0 %v3225_v19 }
  0x67   :  { %2801 = vmatpush3.bf16.msra.mxu1 %v3252_v40 }
  0x68   :  { %798 = vmatpush1.bf16.msra.mxu0 %v3223_v20  ;;  %2802 = vmatprep.subr.bf16.mxu1 %v3256_v42  ;;  %v124_v20 = vrot.slane %v111_v3, %v3723_v16  ;;  %v3293_v42 = vld [vmem:[#allocation4 + $0x1d0] ss:$12 sps:$4 sm:$0xff]   ;;  %v3321_v3 = vld [vmem:[#allocation4 + $0x28c] ss:$12 sps:$4 sm:$0xff]  }
  0x69   :  { %799 = vmatprep.subr.bf16.mxu0 %v3228_v21 }
  0x6b   :  { %2803 = vmatpush3.bf16.msra.mxu1 %v3257_v44  ;;  %v3294_v44 = vld [vmem:[#allocation4 + $0x1e0] ss:$12 sps:$4 sm:$0xff]  }
  0x6c   :  { %800 = vmatpush1.bf16.msra.mxu0 %v3226_v22  ;;  %2804 = vmatprep.subr.bf16.mxu1 %v3261_v46  ;;  %v3300_v46 = vld [vmem:[#allocation4 + $0x1fc] ss:$12 sps:$4 sm:$0xff]  }
  0x6d   :  { %801 = vmatprep.subr.bf16.mxu0 %v3231_v23 }
  0x6f   :  { %2805 = vmatpush3.bf16.msra.mxu1 %v3262_v48  ;;  %v3301_v48 = vld [vmem:[#allocation4 + $0x200] ss:$12 sps:$4 sm:$0xff]  }
  0x70   :  { %802 = vmatpush1.bf16.msra.mxu0 %v3229_v24  ;;  %2806 = vmatprep.subr.bf16.mxu1 %v3266_v50  ;;  %v3302_v50 = vld [vmem:[#allocation4 + $0x210] ss:$12 sps:$4 sm:$0xff]  }
  0x71   :  { %803 = vmatprep.subr.bf16.mxu0 %v3234_v25 }
  0x73   :  { %2807 = vmatpush3.bf16.msra.mxu1 %v3267_v52  ;;  %v3308_v52 = vld [vmem:[#allocation4 + $0x22c] ss:$12 sps:$4 sm:$0xff]  }
  0x74   :  { %804 = vmatpush1.bf16.msra.mxu0 %v3232_v26  ;;  %2808 = vmatprep.subr.bf16.mxu1 %v3271_v54  ;;  %v3306_v54 = vld [vmem:[#allocation4 + $0x228] ss:$12 sps:$4 sm:$0xff]  }
  0x75   :  { %805 = vmatprep.subr.bf16.mxu0 %v3237_v27 }
  0x77   :  { %2809 = vmatpush3.bf16.msra.mxu1 %v3272_v56 }
  0x78   :  { %806 = vmatpush1.bf16.msra.mxu0 %v3235_v28  ;;  %2810 = vmatprep.subr.bf16.mxu1 %v3276_v58  ;;  %v3278_v28 = vld [vmem:[#allocation4 + $0x180] ss:$12 sps:$4 sm:$0xff]   ;;  %v3312_v58 = vld [vmem:[#allocation4 + $0x244] ss:$12 sps:$4 sm:$0xff]  }
  0x79   :  { %807 = vmatprep.subr.bf16.mxu0 %v3240_v29  ;;  %v3281_v29 = vld [vmem:[#allocation4 + $0x188] ss:$12 sps:$4 sm:$0xff]  }
  0x7b   :  { %2811 = vmatpush3.bf16.msra.mxu1 %v3277_v60  ;;  %v3313_v60 = vld [vmem:[#allocation4 + $0x258] ss:$12 sps:$4 sm:$0xff]  }
  0x7c   :  { %808 = vmatpush1.bf16.msra.mxu0 %v3238_v31  ;;  %2976 = vmatprep.subr.bf16.mxu1 %v3630_v1  ;;  %v3284_v31 = vld [vmem:[#allocation4 + $0x19c] ss:$12 sps:$4 sm:$0xff]  }
  0x7d   :  { %809 = vmatprep.subr.bf16.mxu0 %v3245_v33  ;;  %v3285_v33 = vld [vmem:[#allocation4 + $0x1a0] ss:$12 sps:$4 sm:$0xff]  }
  0x80   :  { %810 = vmatpush1.bf16.msra.mxu0 %v3243_v35  ;;  %v3632_v35 = vmov 0  }
  0x81   :  { %811 = vmatprep.subr.bf16.mxu0 %v3250_v37  ;;  %v3289_v37 = vld [vmem:[#allocation4 + $0x1b8] ss:$12 sps:$4 sm:$0xff]  }
  0x84   :  { %812 = vmatpush1.bf16.msra.mxu0 %v3248_v39  ;;  %v3292_v39 = vld [vmem:[#allocation4 + $0x1cc] ss:$12 sps:$4 sm:$0xff]  }
  0x85   :  { %813 = vmatprep.subr.bf16.mxu0 %v3255_v41  ;;  %v3290_v41 = vld [vmem:[#allocation4 + $0x1c8] ss:$12 sps:$4 sm:$0xff]  }
  0x88   :  { %814 = vmatpush1.bf16.msra.mxu0 %v3253_v43  ;;  %v3296_v43 = vld [vmem:[#allocation4 + $0x1e4] ss:$12 sps:$4 sm:$0xff]  }
  0x89   :  { %815 = vmatprep.subr.bf16.mxu0 %v3260_v45  ;;  %v3297_v45 = vld [vmem:[#allocation4 + $0x1e8] ss:$12 sps:$4 sm:$0xff]  }
  0x8c   :  { %816 = vmatpush1.bf16.msra.mxu0 %v3258_v47  ;;  %v3298_v47 = vld [vmem:[#allocation4 + $0x1f8] ss:$12 sps:$4 sm:$0xff]  }
  0x8d   :  { %817 = vmatprep.subr.bf16.mxu0 %v3265_v49  ;;  %v3304_v49 = vld [vmem:[#allocation4 + $0x214] ss:$12 sps:$4 sm:$0xff]  }
  0x90   :  { %818 = vmatpush1.bf16.msra.mxu0 %v3263_v51  ;;  %v3305_v51 = vld [vmem:[#allocation4 + $0x218] ss:$12 sps:$4 sm:$0xff]  }
  0x91   :  { %819 = vmatprep.subr.bf16.mxu0 %v3270_v53 }
  0x94   :  { %820 = vmatpush1.bf16.msra.mxu0 %v3268_v55  ;;  %v3309_v55 = vld [vmem:[#allocation4 + $0x230] ss:$12 sps:$4 sm:$0xff]  }
  0x95   :  { %821 = vmatprep.subr.bf16.mxu0 %v3275_v57 }
  0x98   :  { %822 = vmatpush1.bf16.msra.mxu0 %v3273_v59  ;;  %v3310_v59 = vld [vmem:[#allocation4 + $0x240] ss:$12 sps:$4 sm:$0xff]  }
  0x99   :  { %832 = vmatprep.subr.bf16.mxu0 %v3280_v61  ;;  %v3315_v61 = vld [vmem:[#allocation4 + $0x25c] ss:$12 sps:$4 sm:$0xff]  }
 0x12e   :  { %v194_v7 = vpop.f32.mrb[0].mxu0 }
 0x12f   :  { %v195_v8 = vadd.f32 %v194_v7, %v116_v5  ;;  %v196_v9 = vpop.f32.mrb[1].mxu0  ;;  %v3319_v5 = vld [vmem:[#allocation4 + $0x288] ss:$12 sps:$4 sm:$0xff]   ;;  %v3322_v7 = vld [vmem:[#allocation4 + $0x2a0] ss:$12 sps:$4 sm:$0xff]  }
 0x130   :  { %v197_v10 = vadd.f32 %v196_v9, %v120_v6  ;;  %v3324_v6 = vld [vmem:[#allocation4 + $0x2a4] ss:$12 sps:$4 sm:$0xff]  }
 0x131   :  { %v265_v11 = vpop.f32.mrb[0].mxu1  ;;  %v2547_v12 = vmul.f32 -1.442695, %v195_v8  ;;  %v3325_v9 = vld [vmem:[#allocation4 + $0x2b8] ss:$12 sps:$4 sm:$0xff]  }
 0x132   :  { %v2975_v13 = vpop.f32.mrb[1].mxu1  ;;  %v2548_v14 = vmul.f32 -1.442695, %v197_v10  ;;  %v3726_v21 = vadd.f32 %v265_v11, %v124_v20  ;;  %v3328_v11 = vld [vmem:[#allocation4 + $0x2d0] ss:$12 sps:$4 sm:$0xff]  }
 0x133   :  { %3502 = vpow2.f32 %v2547_v12  ;;  %v3333_v12 = vld [vmem:[#allocation4 + $0x2ec] ss:$12 sps:$4 sm:$0xff]   ;;  %v3331_v13 = vld [vmem:[#allocation4 + $0x2e8] ss:$12 sps:$4 sm:$0xff]  }
 0x134   :  { %3504 = vpow2.f32 %v2548_v14  ;;  %v2549_v22 = vmul.f32 -1.442695, %v3726_v21  ;;  %v3336_v14 = vld [vmem:[#allocation4 + $0x304] ss:$12 sps:$4 sm:$0xff]   ;;  %v3342_v20 = vld [vmem:[#allocation4 + $0x320] ss:$12 sps:$4 sm:$0xff]  }
 0x13d   :  { %v3503_v15 = vpop.eup %3502 }
 0x13e   :  { %v3505_v17 = vpop.eup %3504  ;;  %v278_v18 = vadd.f32 1.0, %v3503_v15  ;;  %v3337_v15 = vld [vmem:[#allocation4 + $0x308] ss:$12 sps:$4 sm:$0xff]  }
 0x13f   :  { %v279_v19 = vadd.f32 1.0, %v3505_v17  ;;  %v3334_v17 = vld [vmem:[#allocation4 + $0x300] ss:$12 sps:$4 sm:$0xff]  }
 0x140   :  { %3506 = vrcp.f32 %v278_v18  ;;  %v3338_v18 = vld [vmem:[#allocation4 + $0x248] ss:$12 sps:$4 sm:$0xff]  }
 0x141   :  { %3508 = vrcp.f32 %v279_v19  ;;  %v3341_v19 = vld [vmem:[#allocation4 + $0x31c] ss:$12 sps:$4 sm:$0xff]  }
 0x142   :  { %3510 = vpow2.f32 %v2549_v22  ;;  %v3343_v22 = vld [vmem:[#allocation4 + $0x260] ss:$12 sps:$4 sm:$0xff]  }
 0x14a   :  { %v3507_v23 = vpop.eup %3506 }
 0x14b   :  { %v3509_v24 = vpop.eup %3508  ;;  %v287_v25 = vmul.f32 %v3507_v23, %v195_v8  ;;  %v3327_v8 = vld [vmem:[#allocation4 + $0x2bc] ss:$12 sps:$4 sm:$0xff]   ;;  %v3346_v23 = vld [vmem:[#allocation4 + $0x334] ss:$12 sps:$4 sm:$0xff]  }
 0x14c   :  { %v288_v26 = vmul.f32 %v3509_v24, %v197_v10  ;;  %v3511_v38 = vpop.eup %3510  ;;  %v3330_v10 = vld [vmem:[#allocation4 + $0x2d4] ss:$12 sps:$4 sm:$0xff]   ;;  %v3347_v24 = vld [vmem:[#allocation4 + $0x338] ss:$12 sps:$4 sm:$0xff]  }
 0x14d   :  { %v290_v30 = vpack.c.bf16 %v287_v25, %v287_v25  ;;  %v280_v40 = vadd.f32 1.0, %v3511_v38  ;;  %v3344_v25 = vld [vmem:[#allocation4 + $0x330] ss:$12 sps:$4 sm:$0xff]   ;;  %v3359_v38 = vld [vmem:[#allocation4 + $0x378] ss:$12 sps:$4 sm:$0xff]  }
 0x14e   :  { %v291_v27 = vpack.c.bf16 %v288_v26, %v288_v26  ;;  %v3348_v26 = vld [vmem:[#allocation4 + $0x278] ss:$12 sps:$4 sm:$0xff]  }
 0x14f   :  { %3512 = vrcp.f32 %v280_v40  ;;  %v3366_v40 = vld [vmem:[#allocation4 + $0x394] ss:$12 sps:$4 sm:$0xff]  }
 0x150   :  { %823 = vmatprep.mubr.bf16.mxu0 %v291_v27  ;;  %905 = vmatprep.mubr.bf16.mxu1 %v291_v27  ;;  %v3351_v27 = vld [vmem:[#allocation4 + $0x34c] ss:$12 sps:$4 sm:$0xff]  }
 0x151   :  { %824 = vmatmul.mubr.bf16.vlgmr.msra.gmra.mrb[4].mxu0 %v290_v30  ;;  %906 = vmatmul.mubr.bf16.vlgmr.msra.gmra.mrb[4].mxu1 %v290_v30  ;;  %v3353_v30 = vld [vmem:[#allocation4 + $0x290] ss:$12 sps:$4 sm:$0xff]  }
 0x152   :  { %833 = vmatpush1.bf16.msra.mxu0 %v3278_v28  ;;  %2977 = vmatpush3.bf16.msra.mxu1 %v3281_v29  ;;  %v3352_v28 = vld [vmem:[#allocation4 + $0x350] ss:$12 sps:$4 sm:$0xff]   ;;  %v3349_v29 = vld [vmem:[#allocation4 + $0x348] ss:$12 sps:$4 sm:$0xff]  }
 0x153   :  { %834 = vmatprep.subr.bf16.mxu0 %v3284_v31  ;;  %2978 = vmatprep.subr.bf16.mxu1 %v3630_v1  ;;  %v3356_v31 = vld [vmem:[#allocation4 + $0x364] ss:$12 sps:$4 sm:$0xff]  }
 0x154   :  { %864 = vmatprep.mubr.bf16.mxu0 %v3632_v35  ;;  %2992 = vmatprep.mubr.msk.bf16.mxu1 %vm3631_vm0, %v3630_v1 }
 0x156   :  { %835 = vmatpush1.bf16.msra.mxu0 %v3282_v32  ;;  %2979 = vmatpush3.bf16.msra.mxu1 %v3285_v33  ;;  %v3357_v32 = vld [vmem:[#allocation4 + $0x368] ss:$12 sps:$4 sm:$0xff]   ;;  %v3354_v33 = vld [vmem:[#allocation4 + $0x360] ss:$12 sps:$4 sm:$0xff]  }
 0x157   :  { %836 = vmatprep.subr.bf16.mxu0 %v3288_v34  ;;  %2980 = vmatprep.subr.bf16.mxu1 %v3630_v1  ;;  %v3358_v34 = vld [vmem:[#allocation4 + $0x2a8] ss:$12 sps:$4 sm:$0xff]  }
 0x159   :  { %v3513_v53 = vpop.eup %3512 }
 0x15a   :  { %837 = vmatpush1.bf16.msra.mxu0 %v3286_v36  ;;  %2981 = vmatpush3.bf16.msra.mxu1 %v3289_v37  ;;  %v289_v56 = vmul.f32 %v3513_v53, %v3726_v21  ;;  %v3339_v21 = vld [vmem:[#allocation4 + $0x318] ss:$12 sps:$4 sm:$0xff]   ;;  %v3361_v36 = vld [vmem:[#allocation4 + $0x37c] ss:$12 sps:$4 sm:$0xff]   ;;  %v3362_v37 = vld [vmem:[#allocation4 + $0x380] ss:$12 sps:$4 sm:$0xff]  }
 0x15b   :  { %838 = vmatprep.subr.bf16.mxu0 %v3292_v39  ;;  %2982 = vmatprep.subr.bf16.mxu1 %v3630_v1  ;;  %v3363_v39 = vld [vmem:[#allocation4 + $0x2c0] ss:$12 sps:$4 sm:$0xff]  }
 0x15c   :  { %v292_v57 = vpack.c.bf16 %v289_v56, %v289_v56 }
 0x15e   :  { %839 = vmatpush1.bf16.msra.mxu0 %v3290_v41  ;;  %2983 = vmatpush3.bf16.msra.mxu1 %v3293_v42  ;;  %v3367_v41 = vld [vmem:[#allocation4 + $0x398] ss:$12 sps:$4 sm:$0xff]   ;;  %v3364_v42 = vld [vmem:[#allocation4 + $0x390] ss:$12 sps:$4 sm:$0xff]  }
 0x15f   :  { %840 = vmatprep.subr.bf16.mxu0 %v3296_v43  ;;  %2984 = vmatprep.subr.bf16.mxu1 %v3630_v1  ;;  %v3368_v43 = vld [vmem:[#allocation4 + $0x2d8] ss:$12 sps:$4 sm:$0xff]  }
 0x162   :  { %841 = vmatpush1.bf16.msra.mxu0 %v3294_v44  ;;  %2985 = vmatpush3.bf16.msra.mxu1 %v3297_v45  ;;  %v3371_v44 = vld [vmem:[#allocation4 + $0x3ac] ss:$12 sps:$4 sm:$0xff]   ;;  %v3372_v45 = vld [vmem:[#allocation4 + $0x3b0] ss:$12 sps:$4 sm:$0xff]  }
 0x163   :  { %842 = vmatprep.subr.bf16.mxu0 %v3300_v46  ;;  %2986 = vmatprep.subr.bf16.mxu1 %v3630_v1  ;;  %v3369_v46 = vld [vmem:[#allocation4 + $0x3a8] ss:$12 sps:$4 sm:$0xff]  }
 0x166   :  { %843 = vmatpush1.bf16.msra.mxu0 %v3298_v47  ;;  %2987 = vmatpush3.bf16.msra.mxu1 %v3301_v48  ;;  %v3373_v47 = vld [vmem:[#allocation4 + $0x2f0] ss:$12 sps:$4 sm:$0xff]  }
 0x167   :  { %844 = vmatprep.subr.bf16.mxu0 %v3304_v49  ;;  %2988 = vmatprep.subr.bf16.mxu1 %v3630_v1  ;;  %v3376_v48 = vld [vmem:[#allocation4 + $0x3c4] ss:$12 sps:$4 sm:$0xff]  }
 0x16a   :  { %845 = vmatpush1.bf16.msra.mxu0 %v3302_v50  ;;  %2989 = vmatpush3.bf16.msra.mxu1 %v3305_v51 }
 0x16b   :  { %846 = vmatprep.subr.bf16.mxu0 %v3308_v52  ;;  %2990 = vmatprep.subr.bf16.mxu1 %v3630_v1 }
 0x16e   :  { %847 = vmatpush1.bf16.msra.mxu0 %v3306_v54  ;;  %2991 = vmatpush3.bf16.msra.mxu1 %v3309_v55  ;;  %v2550_v54 = vld [vmem:[%s3809_s4 + $0x3] sm:$0x7] }
 0x16f   :  { %1476 = vmatprep.subr.bf16.mxu1 %v3312_v58  ;;  %2827 = vmatprep.subr.bf16.mxu0 %v3337_v15  ;;  %v403_v55 = vrot.slane %v2550_v54, %v3723_v16  ;;  %v395_v56 = vrot.slane %v2550_v54, %v3714_v2 }
 0x171   :  { %865 = vmatmul.mubr.bf16.vlgmr.msra.gmra.mrb[4].mxu0 %v292_v57  ;;  %2993 = vmatmul.mubr.bf16.vlgmr.msra.gmra.mrb[8].mxu1 %v292_v57  ;;  %v399_v57 = vrot.slane %v2550_v54, %v3719_v4  ;;  %v3406_v54 = vld [vmem:[#allocation4 + $0x480] ss:$12 sps:$4 sm:$0xff]  }
 0x172   :  { %1477 = vmatpush1.bf16.msra.mxu1 %v3310_v59  ;;  %2828 = vmatpush3.bf16.msra.mxu0 %v3338_v18 }
 0x173   :  { %1478 = vmatprep.subr.bf16.mxu1 %v3315_v61  ;;  %2829 = vmatprep.subr.bf16.mxu0 %v3342_v20 }
 0x176   :  { %1479 = vmatpush1.bf16.msra.mxu1 %v3313_v60  ;;  %2830 = vmatpush3.bf16.msra.mxu0 %v3343_v22 }
 0x177   :  { %1480 = vmatprep.subr.bf16.mxu1 %v3318_v62  ;;  %2831 = vmatprep.subr.bf16.mxu0 %v3347_v24  ;;  %v3377_v24 = vld [vmem:[#allocation4 + $0x3c8] ss:$12 sps:$4 sm:$0xff]  }
 0x17a   :  { %1481 = vmatpush1.bf16.msra.mxu1 %v3316_v63  ;;  %2832 = vmatpush3.bf16.msra.mxu0 %v3348_v26  ;;  %v3380_v26 = vld [vmem:[#allocation4 + $0x3dc] ss:$12 sps:$4 sm:$0xff]  }
 0x17b   :  { %1482 = vmatprep.subr.bf16.mxu1 %v3321_v3  ;;  %2833 = vmatprep.subr.bf16.mxu0 %v3352_v28  ;;  %v3381_v28 = vld [vmem:[#allocation4 + $0x3e0] ss:$12 sps:$4 sm:$0xff]  }
 0x17e   :  { %1483 = vmatpush1.bf16.msra.mxu1 %v3319_v5  ;;  %2834 = vmatpush3.bf16.msra.mxu0 %v3353_v30  ;;  %v3382_v30 = vld [vmem:[#allocation4 + $0x3f0] ss:$12 sps:$4 sm:$0xff]  }
 0x17f   :  { %1484 = vmatprep.subr.bf16.mxu1 %v3324_v6  ;;  %2835 = vmatprep.subr.bf16.mxu0 %v3357_v32 }
 0x182   :  { %1485 = vmatpush1.bf16.msra.mxu1 %v3322_v7  ;;  %2836 = vmatpush3.bf16.msra.mxu0 %v3358_v34 }
 0x183   :  { %1486 = vmatprep.subr.bf16.mxu1 %v3327_v8  ;;  %2837 = vmatprep.subr.bf16.mxu0 %v3362_v37  ;;  %v3389_v37 = vld [vmem:[#allocation4 + $0x410] ss:$12 sps:$4 sm:$0xff]  }
 0x186   :  { %1487 = vmatpush1.bf16.msra.mxu1 %v3325_v9  ;;  %2838 = vmatpush3.bf16.msra.mxu0 %v3363_v39  ;;  %v3390_v39 = vld [vmem:[#allocation4 + $0x420] ss:$12 sps:$4 sm:$0xff]  }
 0x187   :  { %1488 = vmatprep.subr.bf16.mxu1 %v3330_v10  ;;  %2839 = vmatprep.subr.bf16.mxu0 %v3367_v41  ;;  %v3396_v41 = vld [vmem:[#allocation4 + $0x43c] ss:$12 sps:$4 sm:$0xff]  }
 0x18a   :  { %1489 = vmatpush1.bf16.msra.mxu1 %v3328_v11  ;;  %2840 = vmatpush3.bf16.msra.mxu0 %v3368_v43  ;;  %v3397_v43 = vld [vmem:[#allocation4 + $0x440] ss:$12 sps:$4 sm:$0xff]  }
 0x18b   :  { %1490 = vmatprep.subr.bf16.mxu1 %v3333_v12  ;;  %2841 = vmatprep.subr.bf16.mxu0 %v3372_v45  ;;  %v3398_v45 = vld [vmem:[#allocation4 + $0x450] ss:$12 sps:$4 sm:$0xff]  }
 0x18e   :  { %1491 = vmatpush1.bf16.msra.mxu1 %v3331_v13  ;;  %2842 = vmatpush3.bf16.msra.mxu0 %v3373_v47  ;;  %v3404_v47 = vld [vmem:[#allocation4 + $0x46c] ss:$12 sps:$4 sm:$0xff]  }
 0x18f   :  { %1492 = vmatprep.subr.bf16.mxu1 %v3336_v14  ;;  %2996 = vmatprep.subr.bf16.mxu0 %v3630_v1 }
 0x192   :  { %1493 = vmatpush1.bf16.msra.mxu1 %v3334_v17 }
 0x193   :  { %1494 = vmatprep.subr.bf16.mxu1 %v3341_v19 }
 0x196   :  { %1495 = vmatpush1.bf16.msra.mxu1 %v3339_v21 }
 0x197   :  { %1496 = vmatprep.subr.bf16.mxu1 %v3346_v23  ;;  %v3374_v23 = vld [vmem:[#allocation4 + $0x3c0] ss:$12 sps:$4 sm:$0xff]  }
 0x19a   :  { %1497 = vmatpush1.bf16.msra.mxu1 %v3344_v25 }
 0x19b   :  { %1498 = vmatprep.subr.bf16.mxu1 %v3351_v27  ;;  %v3378_v27 = vld [vmem:[#allocation4 + $0x3d8] ss:$12 sps:$4 sm:$0xff]  }
 0x19e   :  { %1499 = vmatpush1.bf16.msra.mxu1 %v3349_v29  ;;  %v3384_v29 = vld [vmem:[#allocation4 + $0x3f4] ss:$12 sps:$4 sm:$0xff]  }
 0x19f   :  { %1500 = vmatprep.subr.bf16.mxu1 %v3356_v31  ;;  %v3385_v31 = vld [vmem:[#allocation4 + $0x3f8] ss:$12 sps:$4 sm:$0xff]  }
 0x1a2   :  { %1501 = vmatpush1.bf16.msra.mxu1 %v3354_v33  ;;  %v3388_v33 = vld [vmem:[#allocation4 + $0x40c] ss:$12 sps:$4 sm:$0xff]  }
 0x1a3   :  { %1502 = vmatprep.subr.bf16.mxu1 %v3361_v36  ;;  %v3386_v36 = vld [vmem:[#allocation4 + $0x408] ss:$12 sps:$4 sm:$0xff]  }
 0x1a6   :  { %1503 = vmatpush1.bf16.msra.mxu1 %v3359_v38  ;;  %v3392_v38 = vld [vmem:[#allocation4 + $0x424] ss:$12 sps:$4 sm:$0xff]  }
 0x1a7   :  { %1504 = vmatprep.subr.bf16.mxu1 %v3366_v40  ;;  %v3393_v40 = vld [vmem:[#allocation4 + $0x428] ss:$12 sps:$4 sm:$0xff]  }
 0x1aa   :  { %1505 = vmatpush1.bf16.msra.mxu1 %v3364_v42  ;;  %v3394_v42 = vld [vmem:[#allocation4 + $0x438] ss:$12 sps:$4 sm:$0xff]  }
 0x1ab   :  { %1506 = vmatprep.subr.bf16.mxu1 %v3371_v44  ;;  %v3400_v44 = vld [vmem:[#allocation4 + $0x454] ss:$12 sps:$4 sm:$0xff]  }
 0x1ae   :  { %1507 = vmatpush1.bf16.msra.mxu1 %v3369_v46  ;;  %v3401_v46 = vld [vmem:[#allocation4 + $0x458] ss:$12 sps:$4 sm:$0xff]  }
 0x1af   :  { %1517 = vmatprep.subr.bf16.mxu1 %v3376_v48 }
 0x224   :  { %v2812_v49 = vpop.f32.mrb[4].mxu1 }
 0x225   :  { %v2813_v50 = vpop.f32.mrb[5].mxu1 }
 0x226   :  { %v2814_v51 = vadd.f32 %v2813_v50, %v2812_v49  ;;  %v2815_v52 = vpop.f32.mrb[6].mxu1  ;;  %v3402_v49 = vld [vmem:[#allocation4 + $0x468] ss:$12 sps:$4 sm:$0xff]   ;;  %v3405_v50 = vld [vmem:[#allocation4 + $0x470] ss:$12 sps:$4 sm:$0xff]  }
 0x227   :  { %v2816_v53 = vpop.f32.mrb[7].mxu1 }
 0x228   :  { %v908_v58 = vadd.f32 %v2814_v51, %v403_v55  ;;  %v3408_v53 = vld [vmem:[#allocation4 + $0x484] ss:$12 sps:$4 sm:$0xff]  }
 0x229   :  { %v3409_v55 = vld [vmem:[#allocation4 + $0x498] ss:$12 sps:$4 sm:$0xff]  }
 0x244   :  { %v866_v59 = vpop.f32.mrb[4].mxu0  ;;  %v947_v60 = vpop.f32.mrb[8].mxu1 }
 0x245   :  { %v3183_v61 = vadd.f32 %v866_v59, %v395_v56  ;;  %v3747_v62 = vadd.f32 %v947_v60, %v908_v58  ;;  %v868_v63 = vpop.f32.mrb[5].mxu0  ;;  %v2994_v3 = vpop.f32.mrb[9].mxu1  ;;  %v3411_v56 = vld [vmem:[#allocation4 + $0x49c] ss:$12 sps:$4 sm:$0xff]   ;;  %v3417_v59 = vld [vmem:[#allocation4 + $0x4cc] ss:$12 sps:$4 sm:$0xff]  }
 0x246   :  { %v3184_v5 = vadd.f32 %v868_v63, %v399_v57  ;;  %v870_v6 = vpop.f32.mrb[6].mxu0  ;;  %v950_v7 = vpop.f32.mrb[10].mxu1  ;;  %v3414_v57 = vld [vmem:[#allocation4 + $0x4b4] ss:$12 sps:$4 sm:$0xff]   ;;  %v3412_v58 = vld [vmem:[#allocation4 + $0x4b0] ss:$12 sps:$4 sm:$0xff]  }
 0x247   :  { %v2623_v8 = vmul.f32 -1.442695, %v3183_v61  ;;  %v871_v9 = vpop.f32.mrb[7].mxu0  ;;  %v2995_v10 = vpop.f32.mrb[11].mxu1  ;;  %v2625_v18 = vmul.f32 -1.442695, %v3747_v62 }
 0x248   :  { %v2624_v11 = vmul.f32 -1.442695, %v3184_v5  ;;  %v3415_v60 = vld [vmem:[#allocation4 + $0x4c8] ss:$12 sps:$4 sm:$0xff]   ;;  %v3421_v3 = vld [vmem:[#allocation4 + $0x4f8] ss:$12 sps:$4 sm:$0xff]  }
 0x249   :  { %3514 = vpow2.f32 %v2623_v8  ;;  %v3423_v63 = vld [vmem:[#allocation4 + $0x4fc] ss:$12 sps:$4 sm:$0xff]   ;;  %v3429_v7 = vld [vmem:[#allocation4 + $0x52c] ss:$12 sps:$4 sm:$0xff]   ;;  %v3432_v9 = vld [vmem:[#allocation4 + $0x544] ss:$12 sps:$4 sm:$0xff]  }
 0x24a   :  { %3516 = vpow2.f32 %v2624_v11  ;;  %v3424_v6 = vld [vmem:[#allocation4 + $0x510] ss:$12 sps:$4 sm:$0xff]   ;;  %v3427_v8 = vld [vmem:[#allocation4 + $0x528] ss:$12 sps:$4 sm:$0xff]   ;;  %v3430_v11 = vld [vmem:[#allocation4 + $0x540] ss:$12 sps:$4 sm:$0xff]  }
 0x24b   :  { %v3433_v10 = vld [vmem:[#allocation4 + $0x548] ss:$12 sps:$4 sm:$0xff]  }
 0x253   :  { %v3515_v12 = vpop.eup %3514 }
 0x254   :  { %v962_v13 = vadd.f32 1.0, %v3515_v12  ;;  %v3517_v14 = vpop.eup %3516  ;;  %v3434_v12 = vld [vmem:[#allocation4 + $0x488] ss:$12 sps:$4 sm:$0xff]  }
 0x255   :  { %v963_v15 = vadd.f32 1.0, %v3517_v14  ;;  %v3438_v14 = vld [vmem:[#allocation4 + $0x560] ss:$12 sps:$4 sm:$0xff]  }
 0x256   :  { %3518 = vrcp.f32 %v962_v13  ;;  %v3437_v13 = vld [vmem:[#allocation4 + $0x55c] ss:$12 sps:$4 sm:$0xff]  }
 0x257   :  { %3520 = vrcp.f32 %v963_v15  ;;  %v3435_v15 = vld [vmem:[#allocation4 + $0x558] ss:$12 sps:$4 sm:$0xff]  }
 0x258   :  { %3522 = vpow2.f32 %v2625_v18  ;;  %v3442_v18 = vld [vmem:[#allocation4 + $0x574] ss:$12 sps:$4 sm:$0xff]  }
 0x260   :  { %v3519_v17 = vpop.eup %3518 }
 0x261   :  { %v3521_v19 = vpop.eup %3520  ;;  %v971_v20 = vmul.f32 %v3519_v17, %v3183_v61  ;;  %v3420_v61 = vld [vmem:[#allocation4 + $0x4e4] ss:$12 sps:$4 sm:$0xff]   ;;  %v3439_v17 = vld [vmem:[#allocation4 + $0x4a0] ss:$12 sps:$4 sm:$0xff]  }
 0x262   :  { %v972_v21 = vmul.f32 %v3521_v19, %v3184_v5  ;;  %v3523_v32 = vpop.eup %3522  ;;  %v3426_v5 = vld [vmem:[#allocation4 + $0x514] ss:$12 sps:$4 sm:$0xff]   ;;  %v3443_v19 = vld [vmem:[#allocation4 + $0x578] ss:$12 sps:$4 sm:$0xff]  }
 0x263   :  { %v974_v25 = vpack.c.bf16 %v971_v20, %v971_v20  ;;  %v964_v34 = vadd.f32 1.0, %v3523_v32  ;;  %v3440_v20 = vld [vmem:[#allocation4 + $0x570] ss:$12 sps:$4 sm:$0xff]   ;;  %v3455_v32 = vld [vmem:[#allocation4 + $0x5b8] ss:$12 sps:$4 sm:$0xff]  }
 0x264   :  { %v975_v22 = vpack.c.bf16 %v972_v21, %v972_v21  ;;  %v3444_v21 = vld [vmem:[#allocation4 + $0x4b8] ss:$12 sps:$4 sm:$0xff]  }
 0x265   :  { %3524 = vrcp.f32 %v964_v34  ;;  %v3462_v34 = vld [vmem:[#allocation4 + $0x5d4] ss:$12 sps:$4 sm:$0xff]  }
 0x266   :  { %1508 = vmatprep.mubr.bf16.mxu1 %v975_v22  ;;  %1590 = vmatprep.mubr.bf16.mxu0 %v975_v22  ;;  %v3447_v22 = vld [vmem:[#allocation4 + $0x58c] ss:$12 sps:$4 sm:$0xff]  }
 0x267   :  { %1509 = vmatmul.mubr.bf16.vlgmr.msra.gmra.mrb[12].mxu1 %v974_v25  ;;  %1591 = vmatmul.mubr.bf16.vlgmr.msra.gmra.mrb[8].mxu0 %v974_v25  ;;  %v3449_v25 = vld [vmem:[#allocation4 + $0x4d0] ss:$12 sps:$4 sm:$0xff]  }
 0x268   :  { %1518 = vmatpush1.bf16.msra.mxu1 %v3374_v23  ;;  %2997 = vmatpush3.bf16.msra.mxu0 %v3377_v24  ;;  %v3448_v23 = vld [vmem:[#allocation4 + $0x590] ss:$12 sps:$4 sm:$0xff]   ;;  %v3445_v24 = vld [vmem:[#allocation4 + $0x588] ss:$12 sps:$4 sm:$0xff]  }
 0x269   :  { %1519 = vmatprep.subr.bf16.mxu1 %v3380_v26  ;;  %2998 = vmatprep.subr.bf16.mxu0 %v3630_v1  ;;  %v3452_v26 = vld [vmem:[#allocation4 + $0x5a4] ss:$12 sps:$4 sm:$0xff]  }
 0x26a   :  { %1549 = vmatprep.mubr.bf16.mxu1 %v3632_v35  ;;  %3012 = vmatprep.mubr.msk.bf16.mxu0 %vm3631_vm0, %v3630_v1 }
 0x26c   :  { %1520 = vmatpush1.bf16.msra.mxu1 %v3378_v27  ;;  %2999 = vmatpush3.bf16.msra.mxu0 %v3381_v28  ;;  %v3453_v27 = vld [vmem:[#allocation4 + $0x5a8] ss:$12 sps:$4 sm:$0xff]   ;;  %v3450_v28 = vld [vmem:[#allocation4 + $0x5a0] ss:$12 sps:$4 sm:$0xff]  }
 0x26d   :  { %1521 = vmatprep.subr.bf16.mxu1 %v3384_v29  ;;  %3000 = vmatprep.subr.bf16.mxu0 %v3630_v1  ;;  %v3454_v29 = vld [vmem:[#allocation4 + $0x4e8] ss:$12 sps:$4 sm:$0xff]  }
 0x26f   :  { %v3525_v48 = vpop.eup %3524 }
 0x270   :  { %1522 = vmatpush1.bf16.msra.mxu1 %v3382_v30  ;;  %3001 = vmatpush3.bf16.msra.mxu0 %v3385_v31  ;;  %v973_v51 = vmul.f32 %v3525_v48, %v3747_v62  ;;  %v3418_v62 = vld [vmem:[#allocation4 + $0x4e0] ss:$12 sps:$4 sm:$0xff]   ;;  %v3457_v30 = vld [vmem:[#allocation4 + $0x5bc] ss:$12 sps:$4 sm:$0xff]  }
 0x271   :  { %1523 = vmatprep.subr.bf16.mxu1 %v3388_v33  ;;  %3002 = vmatprep.subr.bf16.mxu0 %v3630_v1  ;;  %v3458_v31 = vld [vmem:[#allocation4 + $0x5c0] ss:$12 sps:$4 sm:$0xff]  }
 0x272   :  { %v976_v52 = vpack.c.bf16 %v973_v51, %v973_v51  ;;  %v3459_v33 = vld [vmem:[#allocation4 + $0x500] ss:$12 sps:$4 sm:$0xff]  }
 0x274   :  { %1524 = vmatpush1.bf16.msra.mxu1 %v3386_v36  ;;  %3003 = vmatpush3.bf16.msra.mxu0 %v3389_v37  ;;  %v3463_v36 = vld [vmem:[#allocation4 + $0x5d8] ss:$12 sps:$4 sm:$0xff]   ;;  %v3460_v37 = vld [vmem:[#allocation4 + $0x5d0] ss:$12 sps:$4 sm:$0xff]  }
 0x275   :  { %1525 = vmatprep.subr.bf16.mxu1 %v3392_v38  ;;  %3004 = vmatprep.subr.bf16.mxu0 %v3630_v1  ;;  %v3464_v38 = vld [vmem:[#allocation4 + $0x518] ss:$12 sps:$4 sm:$0xff]  }
 0x278   :  { %1526 = vmatpush1.bf16.msra.mxu1 %v3390_v39  ;;  %3005 = vmatpush3.bf16.msra.mxu0 %v3393_v40  ;;  %v3467_v39 = vld [vmem:[#allocation4 + $0x5ec] ss:$12 sps:$4 sm:$0xff]   ;;  %v3468_v40 = vld [vmem:[#allocation4 + $0x5f0] ss:$12 sps:$4 sm:$0xff]  }
 0x279   :  { %1527 = vmatprep.subr.bf16.mxu1 %v3396_v41  ;;  %3006 = vmatprep.subr.bf16.mxu0 %v3630_v1  ;;  %v3465_v41 = vld [vmem:[#allocation4 + $0x5e8] ss:$12 sps:$4 sm:$0xff]  }
 0x27c   :  { %1528 = vmatpush1.bf16.msra.mxu1 %v3394_v42  ;;  %3007 = vmatpush3.bf16.msra.mxu0 %v3397_v43  ;;  %v3469_v42 = vld [vmem:[#allocation4 + $0x530] ss:$12 sps:$4 sm:$0xff]  }
 0x27d   :  { %1529 = vmatprep.subr.bf16.mxu1 %v3400_v44  ;;  %3008 = vmatprep.subr.bf16.mxu0 %v3630_v1  ;;  %v3472_v43 = vld [vmem:[#allocation4 + $0x604] ss:$12 sps:$4 sm:$0xff]  }
 0x280   :  { %1530 = vmatpush1.bf16.msra.mxu1 %v3398_v45  ;;  %3009 = vmatpush3.bf16.msra.mxu0 %v3401_v46 }
 0x281   :  { %1531 = vmatprep.subr.bf16.mxu1 %v3404_v47  ;;  %3010 = vmatprep.subr.bf16.mxu0 %v3630_v1 }
 0x284   :  { %1532 = vmatpush1.bf16.msra.mxu1 %v3402_v49  ;;  %3011 = vmatpush3.bf16.msra.mxu0 %v3405_v50  ;;  %v2626_v49 = vld [vmem:[%s3809_s4 + $0x6] sm:$0x7] }
 0x285   :  { %2161 = vmatprep.subr.bf16.mxu0 %v3408_v53  ;;  %2858 = vmatprep.subr.bf16.mxu1 %v3433_v10  ;;  %v1088_v50 = vrot.slane %v2626_v49, %v3723_v16  ;;  %v1080_v51 = vrot.slane %v2626_v49, %v3714_v2 }
 0x287   :  { %1550 = vmatmul.mubr.bf16.vlgmr.msra.gmra.mrb[12].mxu1 %v976_v52  ;;  %3013 = vmatmul.mubr.bf16.vlgmr.msra.gmra.mrb[12].mxu0 %v976_v52  ;;  %v1084_v52 = vrot.slane %v2626_v49, %v3719_v4 }
 0x288   :  { %2162 = vmatpush1.bf16.msra.mxu0 %v3406_v54  ;;  %2859 = vmatpush3.bf16.msra.mxu1 %v3434_v12 }
 0x289   :  { %2163 = vmatprep.subr.bf16.mxu0 %v3411_v56  ;;  %2860 = vmatprep.subr.bf16.mxu1 %v3438_v14 }
 0x28c   :  { %2164 = vmatpush1.bf16.msra.mxu0 %v3409_v55  ;;  %2861 = vmatpush3.bf16.msra.mxu1 %v3439_v17 }
 0x28d   :  { %2165 = vmatprep.subr.bf16.mxu0 %v3414_v57  ;;  %2862 = vmatprep.subr.bf16.mxu1 %v3443_v19  ;;  %v3473_v19 = vld [vmem:[#allocation4 + $0x608] ss:$12 sps:$4 sm:$0xff]  }
 0x290   :  { %2166 = vmatpush1.bf16.msra.mxu0 %v3412_v58  ;;  %2863 = vmatpush3.bf16.msra.mxu1 %v3444_v21  ;;  %v3476_v21 = vld [vmem:[#allocation4 + $0x61c] ss:$12 sps:$4 sm:$0xff]  }
 0x291   :  { %2167 = vmatprep.subr.bf16.mxu0 %v3417_v59  ;;  %2864 = vmatprep.subr.bf16.mxu1 %v3448_v23  ;;  %v3477_v23 = vld [vmem:[#allocation4 + $0x620] ss:$12 sps:$4 sm:$0xff]  }
 0x294   :  { %2168 = vmatpush1.bf16.msra.mxu0 %v3415_v60  ;;  %2865 = vmatpush3.bf16.msra.mxu1 %v3449_v25  ;;  %v3478_v25 = vld [vmem:[#allocation4 + $0x630] ss:$12 sps:$4 sm:$0xff]  }
 0x295   :  { %2169 = vmatprep.subr.bf16.mxu0 %v3420_v61  ;;  %2866 = vmatprep.subr.bf16.mxu1 %v3453_v27 }
 0x298   :  { %2170 = vmatpush1.bf16.msra.mxu0 %v3418_v62  ;;  %2867 = vmatpush3.bf16.msra.mxu1 %v3454_v29 }
 0x299   :  { %2171 = vmatprep.subr.bf16.mxu0 %v3423_v63  ;;  %2868 = vmatprep.subr.bf16.mxu1 %v3458_v31  ;;  %v3485_v31 = vld [vmem:[#allocation4 + $0x650] ss:$12 sps:$4 sm:$0xff]  }
 0x29c   :  { %2172 = vmatpush1.bf16.msra.mxu0 %v3421_v3  ;;  %2869 = vmatpush3.bf16.msra.mxu1 %v3459_v33  ;;  %v3489_v33 = vld [vmem:[#allocation4 + $0x668] ss:$12 sps:$4 sm:$0xff]  }
 0x29d   :  { %2173 = vmatprep.subr.bf16.mxu0 %v3426_v5  ;;  %2870 = vmatprep.subr.bf16.mxu1 %v3463_v36  ;;  %v3490_v36 = vld [vmem:[#allocation4 + $0x678] ss:$12 sps:$4 sm:$0xff]  }
 0x2a0   :  { %2174 = vmatpush1.bf16.msra.mxu0 %v3424_v6  ;;  %2871 = vmatpush3.bf16.msra.mxu1 %v3464_v38  ;;  %v3496_v38 = vld [vmem:[#allocation4 + $0x694] ss:$12 sps:$4 sm:$0xff]  }
 0x2a1   :  { %2175 = vmatprep.subr.bf16.mxu0 %v3429_v7  ;;  %2872 = vmatprep.subr.bf16.mxu1 %v3468_v40  ;;  %v3497_v40 = vld [vmem:[#allocation4 + $0x698] ss:$12 sps:$4 sm:$0xff]  }
 0x2a4   :  { %2176 = vmatpush1.bf16.msra.mxu0 %v3427_v8  ;;  %2873 = vmatpush3.bf16.msra.mxu1 %v3469_v42 }
 0x2a5   :  { %2177 = vmatprep.subr.bf16.mxu0 %v3432_v9  ;;  %3016 = vmatprep.subr.bf16.mxu1 %v3630_v1 }
 0x2a8   :  { %2178 = vmatpush1.bf16.msra.mxu0 %v3430_v11 }
 0x2a9   :  { %2179 = vmatprep.subr.bf16.mxu0 %v3437_v13 }
 0x2ac   :  { %2180 = vmatpush1.bf16.msra.mxu0 %v3435_v15 }
 0x2ad   :  { %2181 = vmatprep.subr.bf16.mxu0 %v3442_v18  ;;  %v3470_v18 = vld [vmem:[#allocation4 + $0x600] ss:$12 sps:$4 sm:$0xff]  }
 0x2b0   :  { %2182 = vmatpush1.bf16.msra.mxu0 %v3440_v20 }
 0x2b1   :  { %2183 = vmatprep.subr.bf16.mxu0 %v3447_v22  ;;  %v3474_v22 = vld [vmem:[#allocation4 + $0x618] ss:$12 sps:$4 sm:$0xff]  }
 0x2b4   :  { %2184 = vmatpush1.bf16.msra.mxu0 %v3445_v24  ;;  %v3480_v24 = vld [vmem:[#allocation4 + $0x634] ss:$12 sps:$4 sm:$0xff]  }
 0x2b5   :  { %2185 = vmatprep.subr.bf16.mxu0 %v3452_v26  ;;  %v3481_v26 = vld [vmem:[#allocation4 + $0x638] ss:$12 sps:$4 sm:$0xff]  }
 0x2b8   :  { %2186 = vmatpush1.bf16.msra.mxu0 %v3450_v28  ;;  %v3484_v28 = vld [vmem:[#allocation4 + $0x64c] ss:$12 sps:$4 sm:$0xff]  }
 0x2b9   :  { %2187 = vmatprep.subr.bf16.mxu0 %v3457_v30  ;;  %v3482_v30 = vld [vmem:[#allocation4 + $0x648] ss:$12 sps:$4 sm:$0xff]  }
 0x2bc   :  { %2188 = vmatpush1.bf16.msra.mxu0 %v3455_v32  ;;  %v3486_v32 = vld [vmem:[#allocation4 + $0x660] ss:$12 sps:$4 sm:$0xff]  }
 0x2bd   :  { %2189 = vmatprep.subr.bf16.mxu0 %v3462_v34  ;;  %v3492_v34 = vld [vmem:[#allocation4 + $0x67c] ss:$12 sps:$4 sm:$0xff]  }
 0x2c0   :  { %2190 = vmatpush1.bf16.msra.mxu0 %v3460_v37  ;;  %v3493_v37 = vld [vmem:[#allocation4 + $0x680] ss:$12 sps:$4 sm:$0xff]  }
 0x2c1   :  { %2191 = vmatprep.subr.bf16.mxu0 %v3467_v39  ;;  %v3494_v39 = vld [vmem:[#allocation4 + $0x690] ss:$12 sps:$4 sm:$0xff]  }
 0x2c4   :  { %2192 = vmatpush1.bf16.msra.mxu0 %v3465_v41  ;;  %v3500_v41 = vld [vmem:[#allocation4 + $0x6ac] ss:$12 sps:$4 sm:$0xff]  }
 0x2c5   :  { %2202 = vmatprep.subr.bf16.mxu0 %v3472_v43  ;;  %v3498_v43 = vld [vmem:[#allocation4 + $0x6a8] ss:$12 sps:$4 sm:$0xff]  }
 0x33a   :  { %v2843_v44 = vpop.f32.mrb[8].mxu0 }
 0x33b   :  { %v2844_v45 = vpop.f32.mrb[9].mxu0 }
 0x33c   :  { %v2845_v46 = vadd.f32 %v2844_v45, %v2843_v44  ;;  %v2846_v47 = vpop.f32.mrb[10].mxu0  ;;  %v3501_v44 = vld [vmem:[#allocation4 + $0x6b0] ss:$12 sps:$4 sm:$0xff]  }
 0x33d   :  { %v2847_v48 = vpop.f32.mrb[11].mxu0  ;;  %v2376_v47 = vld [vmem:[#allocation6 + $0x100] sm:$0xff] }
 0x33e   :  { %v1593_v53 = vadd.f32 %v2845_v46, %v1088_v50  ;;  %v2377_v48 = vld [vmem:[#allocation6 + $0x108] sm:$0xff]  ;;  %v2360_v50 = vld [vmem:[#allocation6 + $0x80] sm:$0xff] }
 0x33f   :  { %v3160_v49 = vpack.c.bf16 %v2377_v48, %v2376_v47  ;;  %v2356_v47 = vld [vmem:[#allocation6 + $0x60] sm:$0xff]  ;;  %v2357_v48 = vld [vmem:[#allocation6 + $0x68] sm:$0xff] }
 0x35a   :  { %v1551_v54 = vpop.f32.mrb[12].mxu1  ;;  %v1632_v55 = vpop.f32.mrb[12].mxu0 }
 0x35b   :  { %v3185_v56 = vadd.f32 %v1551_v54, %v1080_v51  ;;  %v3768_v57 = vadd.f32 %v1632_v55, %v1593_v53  ;;  %v1553_v58 = vpop.f32.mrb[13].mxu1  ;;  %v3014_v59 = vpop.f32.mrb[13].mxu0  ;;  %v2361_v51 = vld [vmem:[#allocation6 + $0x88] sm:$0xff]  ;;  %v2344_v53 = vld [vmem:[#allocation6] sm:$0xff] }
 0x35c   :  { %v3186_v60 = vadd.f32 %v1553_v58, %v1084_v52  ;;  %v1555_v61 = vpop.f32.mrb[14].mxu1  ;;  %v1635_v62 = vpop.f32.mrb[14].mxu0  ;;  %v3127_v52 = vpack.c.bf16 %v2361_v51, %v2360_v50  ;;  %v2345_v54 = vld [vmem:[#allocation6 + $0x8] sm:$0xff]  ;;  %v2362_v59 = vld [vmem:[#allocation6 + $0x90] sm:$0xff]  ;;  %v2391_v51 = vld [vmem:[#allocation6 + $0x178] sm:$0xff] }
 0x35d   :  { %v2699_v63 = vmul.f32 -1.442695, %v3185_v56  ;;  %v1556_v3 = vpop.f32.mrb[15].mxu1  ;;  %v3015_v5 = vpop.f32.mrb[15].mxu0  ;;  %v2701_v12 = vmul.f32 -1.442695, %v3768_v57  ;;  %v3129_v55 = vpack.c.bf16 %v2345_v54, %v2344_v53 }
 0x35e   :  { %v2700_v6 = vmul.f32 -1.442695, %v3186_v60  ;;  %v2346_v61 = vld [vmem:[#allocation6 + $0x10] sm:$0xff]  ;;  %v2347_v62 = vld [vmem:[#allocation6 + $0x18] sm:$0xff]  ;;  %v2380_v3 = vld [vmem:[#allocation6 + $0x120] sm:$0xff] }
 0x35f   :  { %3526 = vpow2.f32 %v2699_v63  ;;  %v3133_v63 = vpack.c.bf16 %v2347_v62, %v2346_v61  ;;  %v2381_v5 = vld [vmem:[#allocation6 + $0x128] sm:$0xff]  ;;  %v2390_v50 = vld [vmem:[#allocation6 + $0x170] sm:$0xff]  ;;  %v2375_v54 = vld [vmem:[#allocation6 + $0xf8] sm:$0xff] }
 0x360   :  { %3528 = vpow2.f32 %v2700_v6  ;;  %v3166_v6 = vpack.c.bf16 %v2381_v5, %v2380_v3  ;;  %v2374_v53 = vld [vmem:[#allocation6 + $0xf0] sm:$0xff] }
 0x369   :  { %v3527_v7 = vpop.eup %3526 }
 0x36a   :  { %v1647_v8 = vadd.f32 1.0, %v3527_v7  ;;  %v3529_v9 = vpop.eup %3528  ;;  %v2364_v7 = vld [vmem:[#allocation6 + $0xa0] sm:$0xff] }
 0x36b   :  { %v1648_v10 = vadd.f32 1.0, %v3529_v9 }
 0x36c   :  { %3530 = vrcp.f32 %v1647_v8  ;;  %v2365_v8 = vld [vmem:[#allocation6 + $0xa8] sm:$0xff] }
 0x36d   :  { %3532 = vrcp.f32 %v1648_v10  ;;  %v3135_v9 = vpack.c.bf16 %v2365_v8, %v2364_v7  ;;  %v2348_v10 = vld [vmem:[#allocation6 + $0x20] sm:$0xff] }
 0x36e   :  { %3534 = vpow2.f32 %v2701_v12 }
 0x376   :  { %v3531_v11 = vpop.eup %3530 }
 0x377   :  { %v3533_v13 = vpop.eup %3532  ;;  %v1656_v14 = vmul.f32 %v3531_v11, %v3185_v56  ;;  %v2378_v56 = vld [vmem:[#allocation6 + $0x110] sm:$0xff]  ;;  %v2349_v11 = vld [vmem:[#allocation6 + $0x28] sm:$0xff] }
 0x378   :  { %v1657_v15 = vmul.f32 %v3533_v13, %v3186_v60  ;;  %v3535_v27 = vpop.eup %3534  ;;  %v2363_v60 = vld [vmem:[#allocation6 + $0x98] sm:$0xff]  ;;  %v3137_v12 = vpack.c.bf16 %v2349_v11, %v2348_v10  ;;  %v2382_v13 = vld [vmem:[#allocation6 + $0x130] sm:$0xff] }
 0x379   :  { %v1659_v20 = vpack.c.bf16 %v1656_v14, %v1656_v14  ;;  %v1649_v29 = vadd.f32 1.0, %v3535_v27  ;;  %v2383_v14 = vld [vmem:[#allocation6 + $0x138] sm:$0xff]  ;;  %v2369_v27 = vld [vmem:[#allocation6 + $0xc8] sm:$0xff] }
 0x37a   :  { %v1660_v17 = vpack.c.bf16 %v1657_v15, %v1657_v15  ;;  %v3169_v15 = vpack.c.bf16 %v2383_v14, %v2382_v13 }
 0x37b   :  { %3536 = vrcp.f32 %v1649_v29  ;;  %v2352_v29 = vld [vmem:[#allocation6 + $0x40] sm:$0xff] }
 0x37c   :  { %2193 = vmatprep.mubr.bf16.mxu0 %v1660_v17  ;;  %2275 = vmatprep.mubr.bf16.mxu1 %v1660_v17  ;;  %v2366_v17 = vld [vmem:[#allocation6 + $0xb0] sm:$0xff] }
 0x37d   :  { %2194 = vmatmul.mubr.bf16.vlgmr.msra.gmra.mrb[16].mxu0 %v1659_v20  ;;  %2276 = vmatmul.mubr.bf16.vlgmr.msra.gmra.mrb[16].mxu1 %v1659_v20  ;;  %v2350_v20 = vld [vmem:[#allocation6 + $0x30] sm:$0xff] }
 0x37e   :  { %2203 = vmatpush1.bf16.msra.mxu0 %v3470_v18  ;;  %3017 = vmatpush3.bf16.msra.mxu1 %v3473_v19  ;;  %v2367_v18 = vld [vmem:[#allocation6 + $0xb8] sm:$0xff] }
 0x37f   :  { %2204 = vmatprep.subr.bf16.mxu0 %v3476_v21  ;;  %3018 = vmatprep.subr.bf16.mxu1 %v3630_v1  ;;  %v3139_v19 = vpack.c.bf16 %v2367_v18, %v2366_v17  ;;  %v2351_v21 = vld [vmem:[#allocation6 + $0x38] sm:$0xff] }
 0x380   :  { %2234 = vmatprep.mubr.bf16.mxu0 %v3632_v35  ;;  %3032 = vmatprep.mubr.msk.bf16.mxu1 %vm3631_vm0, %v3630_v1  ;;  %v3488_v35 = vld [vmem:[#allocation4 + $0x664] ss:$12 sps:$4 sm:$0xff]  }
 0x382   :  { %2205 = vmatpush1.bf16.msra.mxu0 %v3474_v22  ;;  %3019 = vmatpush3.bf16.msra.mxu1 %v3477_v23  ;;  %v3141_v22 = vpack.c.bf16 %v2351_v21, %v2350_v20  ;;  %v2384_v23 = vld [vmem:[#allocation6 + $0x140] sm:$0xff] }
 0x383   :  { %2206 = vmatprep.subr.bf16.mxu0 %v3480_v24  ;;  %3020 = vmatprep.subr.bf16.mxu1 %v3630_v1  ;;  %v2385_v24 = vld [vmem:[#allocation6 + $0x148] sm:$0xff] }
 0x385   :  { %v3537_v42 = vpop.eup %3536 }
 0x386   :  { %2207 = vmatpush1.bf16.msra.mxu0 %v3478_v25  ;;  %3021 = vmatpush3.bf16.msra.mxu1 %v3481_v26  ;;  %v1658_v45 = vmul.f32 %v3537_v42, %v3768_v57  ;;  %v2379_v57 = vld [vmem:[#allocation6 + $0x118] sm:$0xff]  ;;  %v3172_v25 = vpack.c.bf16 %v2385_v24, %v2384_v23  ;;  %v2368_v26 = vld [vmem:[#allocation6 + $0xc0] sm:$0xff]  ;;  %v2389_v42 = vld [vmem:[#allocation6 + $0x168] sm:$0xff] }
 0x387   :  { %2208 = vmatprep.subr.bf16.mxu0 %v3484_v28  ;;  %3022 = vmatprep.subr.bf16.mxu1 %v3630_v1  ;;  %v3163_v58 = vpack.c.bf16 %v2379_v57, %v2378_v56  ;;  %v3143_v28 = vpack.c.bf16 %v2369_v27, %v2368_v26  ;;  %v2358_v56 = vld [vmem:[#allocation6 + $0x70] sm:$0xff]  ;;  %v2359_v57 = vld [vmem:[#allocation6 + $0x78] sm:$0xff] }
 0x388   :  { %v1661_v46 = vpack.c.bf16 %v1658_v45, %v1658_v45  ;;  %v2373_v45 = vld [vmem:[#allocation6 + $0xe8] sm:$0xff] }
 0x38a   :  { %2209 = vmatpush1.bf16.msra.mxu0 %v3482_v30  ;;  %3023 = vmatpush3.bf16.msra.mxu1 %v3485_v31  ;;  %v2353_v30 = vld [vmem:[#allocation6 + $0x48] sm:$0xff] }
 0x38b   :  { %2210 = vmatprep.subr.bf16.mxu0 %v3488_v35  ;;  %3024 = vmatprep.subr.bf16.mxu1 %v3630_v1  ;;  %v3145_v31 = vpack.c.bf16 %v2353_v30, %v2352_v29  ;;  %v2386_v35 = vld [vmem:[#allocation6 + $0x150] sm:$0xff] }
 0x38e   :  { %2211 = vmatpush1.bf16.msra.mxu0 %v3486_v32  ;;  %3025 = vmatpush3.bf16.msra.mxu1 %v3489_v33  ;;  %v2387_v32 = vld [vmem:[#allocation6 + $0x158] sm:$0xff] }
 0x38f   :  { %2212 = vmatprep.subr.bf16.mxu0 %v3492_v34  ;;  %3026 = vmatprep.subr.bf16.mxu1 %v3630_v1  ;;  %v3175_v33 = vpack.c.bf16 %v2387_v32, %v2386_v35  ;;  %v2370_v34 = vld [vmem:[#allocation6 + $0xd0] sm:$0xff]  ;;  %v2778_v35 = vld [vmem:[%s3809_s4 + $0xc] sm:$0x7] }
 0x392   :  { %2213 = vmatpush1.bf16.msra.mxu0 %v3490_v36  ;;  %3027 = vmatpush3.bf16.msra.mxu1 %v3493_v37  ;;  %v2371_v36 = vld [vmem:[#allocation6 + $0xd8] sm:$0xff] }
 0x393   :  { %2214 = vmatprep.subr.bf16.mxu0 %v3496_v38  ;;  %3028 = vmatprep.subr.bf16.mxu1 %v3630_v1  ;;  %v3147_v37 = vpack.c.bf16 %v2371_v36, %v2370_v34  ;;  %v2354_v38 = vld [vmem:[#allocation6 + $0x50] sm:$0xff]  ;;  %v2398_v36 = vrot.slane %v2778_v35, %v3714_v2 }
 0x396   :  { %2215 = vmatpush1.bf16.msra.mxu0 %v3494_v39  ;;  %3029 = vmatpush3.bf16.msra.mxu1 %v3497_v40  ;;  %v2355_v39 = vld [vmem:[#allocation6 + $0x58] sm:$0xff] }
 0x397   :  { %2216 = vmatprep.subr.bf16.mxu0 %v3500_v41  ;;  %3030 = vmatprep.subr.bf16.mxu1 %v3630_v1  ;;  %v3149_v40 = vpack.c.bf16 %v2355_v39, %v2354_v38  ;;  %v2388_v41 = vld [vmem:[#allocation6 + $0x160] sm:$0xff] }
 0x39a   :  { %2217 = vmatpush1.bf16.msra.mxu0 %v3498_v43  ;;  %3031 = vmatpush3.bf16.msra.mxu1 %v3501_v44  ;;  %v3178_v43 = vpack.c.bf16 %v2389_v42, %v2388_v41  ;;  %v2372_v44 = vld [vmem:[#allocation6 + $0xe0] sm:$0xff] }
 0x39b   :  { %3159 = vmatprep.subr.bf16.mxu0 %v3629_v0  ;;  %3128 = vmatprep.subr.bf16.mxu1 %v3127_v52  ;;  %v3181_v52 = vpack.c.bf16 %v2391_v51, %v2390_v50 }
 0x39d   :  { %2235 = vmatmul.mubr.bf16.vlgmr.msra.gmra.mrb[16].mxu0 %v1661_v46  ;;  %3033 = vmatmul.mubr.bf16.vlgmr.msra.gmra.mrb[20].mxu1 %v1661_v46  ;;  %v3151_v46 = vpack.c.bf16 %v2373_v45, %v2372_v44 }
 0x39e   :  { %3068 = vmatprep.mubr.msk.f32.mxu0 %vm3631_vm0, %v3630_v1  ;;  %3161 = vmatpush3.bf16.msra.mxu0 %v3160_v49  ;;  %v3131_v1 = vpack.c.bf16 %v2363_v60, %v2362_v59  ;;  %v3153_v49 = vpack.c.bf16 %v2357_v48, %v2356_v47 }
 0x39f   :  { %3162 = vmatprep.subr.bf16.mxu0 %v3629_v0  ;;  %3130 = vmatpush3.bf16.msra.mxu1 %v3129_v55  ;;  %v3155_v55 = vpack.c.bf16 %v2375_v54, %v2374_v53 }
 0x3a0   :  { %3132 = vmatprep.subr.bf16.mxu1 %v3131_v1 }
 0x3a2   :  { %3164 = vmatpush3.bf16.msra.mxu0 %v3163_v58  ;;  %v3157_v58 = vpack.c.bf16 %v2359_v57, %v2358_v56 }
 0x3a3   :  { %3165 = vmatprep.subr.bf16.mxu0 %v3629_v0  ;;  %3134 = vmatpush3.bf16.msra.mxu1 %v3133_v63 }
 0x3a4   :  { %3136 = vmatprep.subr.bf16.mxu1 %v3135_v9 }
 0x3a6   :  { %3167 = vmatpush3.bf16.msra.mxu0 %v3166_v6 }
 0x3a7   :  { %3168 = vmatprep.subr.bf16.mxu0 %v3629_v0  ;;  %3138 = vmatpush3.bf16.msra.mxu1 %v3137_v12 }
 0x3a8   :  { %3140 = vmatprep.subr.bf16.mxu1 %v3139_v19 }
 0x3aa   :  { %3170 = vmatpush3.bf16.msra.mxu0 %v3169_v15 }
 0x3ab   :  { %3171 = vmatprep.subr.bf16.mxu0 %v3629_v0  ;;  %3142 = vmatpush3.bf16.msra.mxu1 %v3141_v22 }
 0x3ac   :  { %3144 = vmatprep.subr.bf16.mxu1 %v3143_v28 }
 0x3ae   :  { %3173 = vmatpush3.bf16.msra.mxu0 %v3172_v25 }
 0x3af   :  { %3174 = vmatprep.subr.bf16.mxu0 %v3629_v0  ;;  %3146 = vmatpush3.bf16.msra.mxu1 %v3145_v31 }
 0x3b0   :  { %3148 = vmatprep.subr.bf16.mxu1 %v3147_v37 }
 0x3b2   :  { %3176 = vmatpush3.bf16.msra.mxu0 %v3175_v33 }
 0x3b3   :  { %3177 = vmatprep.subr.bf16.mxu0 %v3629_v0  ;;  %3150 = vmatpush3.bf16.msra.mxu1 %v3149_v40 }
 0x3b4   :  { %3152 = vmatprep.subr.bf16.mxu1 %v3151_v46 }
 0x3b6   :  { %3179 = vmatpush3.bf16.msra.mxu0 %v3178_v43 }
 0x3b7   :  { %3180 = vmatprep.subr.bf16.mxu0 %v3629_v0  ;;  %3154 = vmatpush3.bf16.msra.mxu1 %v3153_v49  ;;  %v2702_v0 = vld [vmem:[%s3809_s4 + $0x9] sm:$0x7] }
 0x3b8   :  { %3156 = vmatprep.subr.bf16.mxu1 %v3155_v55  ;;  %v1773_v63 = vrot.slane %v2702_v0, %v3723_v16  ;;  %v1765_v3 = vrot.slane %v2702_v0, %v3714_v2  ;;  %v1769_v5 = vrot.slane %v2702_v0, %v3719_v4 }
 0x3ba   :  { %3182 = vmatpush3.bf16.msra.mxu0 %v3181_v52 }
 0x3bb   :  { %3158 = vmatpush3.bf16.msra.mxu1 %v3157_v58 }
 0x450   :  { %v2874_v59 = vpop.f32.mrb[16].mxu1 }
 0x451   :  { %v2875_v60 = vpop.f32.mrb[17].mxu1 }
 0x452   :  { %v2876_v1 = vadd.f32 %v2875_v60, %v2874_v59  ;;  %v2877_v61 = vpop.f32.mrb[18].mxu1 }
 0x453   :  { %v2878_v62 = vpop.f32.mrb[19].mxu1 }
 0x454   :  { %v2278_v6 = vadd.f32 %v2876_v1, %v1773_v63 }
 0x470   :  { %v2236_v7 = vpop.f32.mrb[16].mxu0  ;;  %v2317_v8 = vpop.f32.mrb[20].mxu1 }
 0x471   :  { %v3187_v9 = vadd.f32 %v2236_v7, %v1765_v3  ;;  %v2318_v10 = vadd.f32 %v2317_v8, %v2278_v6  ;;  %v2238_v11 = vpop.f32.mrb[17].mxu0  ;;  %v3034_v12 = vpop.f32.mrb[21].mxu1 }
 0x472   :  { %v3188_v13 = vadd.f32 %v2238_v11, %v1769_v5  ;;  %v2240_v14 = vpop.f32.mrb[18].mxu0  ;;  %v2320_v15 = vpop.f32.mrb[22].mxu1 }
 0x473   :  { %v2775_v17 = vmul.f32 -1.442695, %v3187_v9  ;;  %v2777_v18 = vmul.f32 -1.442695, %v2318_v10  ;;  %v2241_v19 = vpop.f32.mrb[19].mxu0  ;;  %v3035_v20 = vpop.f32.mrb[23].mxu1 }
 0x474   :  { %v2776_v21 = vmul.f32 -1.442695, %v3188_v13 }
 0x475   :  { %3538 = vpow2.f32 %v2775_v17 }
 0x476   :  { %3540 = vpow2.f32 %v2777_v18 }
 0x477   :  { %3542 = vpow2.f32 %v2776_v21 }
 0x47f   :  { %v3539_v16 = vpop.eup %3538 }
 0x480   :  { %v3541_v4 = vpop.eup %3540  ;;  %v2332_v22 = vadd.f32 1.0, %v3539_v16 }
 0x481   :  { %v3543_v23 = vpop.eup %3542  ;;  %v2334_v24 = vadd.f32 1.0, %v3541_v4 }
 0x482   :  { %3544 = vrcp.f32 %v2332_v22  ;;  %v2333_v25 = vadd.f32 1.0, %v3543_v23 }
 0x483   :  { %3546 = vrcp.f32 %v2334_v24 }
 0x484   :  { %3548 = vrcp.f32 %v2333_v25 }
 0x48c   :  { %v3545_v26 = vpop.eup %3544 }
 0x48d   :  { %v3547_v27 = vpop.eup %3546  ;;  %v2341_v31 = vmul.f32 %v3545_v26, %v3187_v9 }
 0x48e   :  { %v3549_v28 = vpop.eup %3548  ;;  %v2343_v29 = vmul.f32 %v3547_v27, %v2318_v10 }
 0x48f   :  { %v2342_v30 = vmul.f32 %v3549_v28, %v3188_v13 }
 0x490   :  { %3069 = vmatmul.mubr.f32.vlgmr.msra.gmra.mrb[2].mxu0 %v2343_v29 }
 0x491   :  { %2464 = vmatprep.mubr.f32.mxu1 %v2342_v30 }
 0x492   :  { %2465 = vmatmul.mubr.f32.vlgmr.msra.gmra.mrb[2].mxu1 %v2341_v31 }
 0x563   :  { %v2536_v32 = vpop.f32.mrb[2].mxu0 }
 0x564   :  { %v3070_v33 = vpop.f32.mrb[3].mxu0 }
 0x565   :  { %v2921_v34 = vpop.f32.mrb[2].mxu1 }
 0x566   :  { %v2922_v37 = vpop.f32.mrb[3].mxu1 }
 0x567   :  { %v2923_v38 = vadd.f32 %v2922_v37, %v2921_v34 }
 0x569   :  { %v2467_v39 = vadd.f32 %v2923_v38, %v2398_v36 }
 0x56b   :  { %v2537_v40 = vadd.f32 %v2536_v32, %v2467_v39 }
 0x56d   :  { %2540 = vst [vmem:[%s3810_s5] sm:$0xff] %v2537_v40 }
 0x56e   :  { %2545 = vsyncpa [#allocation3], 1 }
 0x56f   :  { %2546 = vsyncpa [#allocation5], 1 }

</bundles_post_ra>
